<compile_context>
chip_gen: v5e
topology: v5e:2x2
jax: 0.10.0
libtpu: 0.0.40
codegen_flags: <defaults>
</compile_context>

<pallas_src>
from functools import partial

import jax
import jax.numpy as jnp
from jax import lax
from jax.experimental import pallas as pl
from jax.experimental.pallas import tpu as pltpu

OUT_PAD = 128  # lane-dense output slab; the real 6 logits live in [:, :6]


def lstm_net_kernel(x_ref, x2_ref, wih_ref, bih_ref, whh_ref,
                    w1m_ref, w1x_ref, b1_ref, w2_ref, b2_ref,
                    out_ref, *, hidden, seq_len, batch):
    H, T, B = hidden, seq_len, batch
    H2 = 2 * H  # stacked [fwd | bwd] hidden width

    # ---- 1) Hoisted input projection: ONE matmul for all T steps (bias
    #         folded in).  Kept in vregs -- no scratch round-trip.
    #         proj row-block t holds, per gate, [x[t]@Wih_f+b_f | x[t]@Wih_b+b_b].
    proj = jnp.dot(x_ref[...], wih_ref[...],
                   preferred_element_type=jnp.float32) + bih_ref[...]

    # Static lane mask: fwd gate columns are the first H lanes of every
    # H2-wide [fwd | bwd] gate block.
    cols = lax.broadcasted_iota(jnp.int32, (B, 8 * H), 1)
    fwd_lane = (cols % H2) < H

    def gx(t):
        # fwd gate columns come from timestep t, bwd columns from T-1-t.
        # Cheap VPU select, off the MXU/EUP critical path (h-independent).
        return jnp.where(fwd_lane,
                         proj[t * B:(t + 1) * B, :],
                         proj[(T - 1 - t) * B:(T - t) * B, :])

    whh = whh_ref[...]  # (2H, 8H) block-diagonal, bf16
    # NOTE: this recurrent matmul reuses the same RHS every step; on v6e+ an
    # explicit pltpu.matmul_push_rhs / matmul_acc_lhs / matmul_pop sequence
    # would hold W_hh resident in the MXU across the unrolled loop.  Kept as
    # jnp.dot for portability at these toy shapes.

    def step(gx_t, h, c):
        # Single fused MXU push for both directions' recurrent term.
        gates = gx_t + jnp.dot(h.astype(whh.dtype), whh,
                               preferred_element_type=jnp.float32)  # (B, 8H)
        sig = jax.nn.sigmoid(gates)            # whole-tile EUP sigmoid
        th = jnp.tanh(gates[:, 2 * H2:])       # tanh over upper half only (g|o)
        i = sig[:, 0 * H2:1 * H2]              # [i_f | i_b]
        f = sig[:, 1 * H2:2 * H2]              # [f_f | f_b]
        g = th[:, :H2]                         # [g_f | g_b]
        o = sig[:, 3 * H2:4 * H2]              # [o_f | o_b]
        c_new = f * c + i * g
        h_new = o * jnp.tanh(c_new)
        return h_new, c_new

    # ---- 2) Fused bidirectional recurrence, fully unrolled (T is static and
    #         small, so all slice indices are static and the LLO scheduler
    #         sees across iterations).
    # TODO(synk): at large T switch to lax.fori_loop(..., unroll=4..8) over a
    # flattened (T*B, 8H) VMEM scratch to bound vreg live ranges.
    zeros = jnp.zeros((B, H2), jnp.float32)
    h, c = step(gx(0), zeros, zeros)           # peel step 0
    m = h                                      # running max seeded with h0
    for s in range(1, T):
        h, c = step(gx(s), h, c)
        m = jnp.maximum(m, h)

    # ---- 3) MaxPool2d((T,1)) == per-feature max over time (== m), then FCN
    #         over [max_f | max_b | x2]; dropout is identity in eval mode.
    h1 = (jnp.dot(m.astype(jnp.bfloat16), w1m_ref[...],
                  preferred_element_type=jnp.float32)
          + x2_ref[...] * w1x_ref[...]
          + b1_ref[...])
    h1 = jnp.maximum(h1, 0.0)                  # ReLU
    logits = jnp.dot(h1.astype(jnp.bfloat16), w2_ref[...],
                     preferred_element_type=jnp.float32) + b2_ref[...]
    out_ref[...] = jax.nn.sigmoid(logits)      # unmasked (B_pad, 128) store


def prepack_params(params, *, lstm_hidden):
    """One-time, input-independent weight packing (hoisted out of forward)."""
    H = lstm_hidden

    def interleave(wf, wb):
        # (rows, 4H) x 2 -> (rows, 8H) with per-gate [fwd | bwd] column blocks
        r = wf.shape[0]
        return jnp.concatenate(
            [wf.reshape(r, 4, H), wb.reshape(r, 4, H)], axis=2
        ).reshape(r, 8 * H)

    # Input projection: NOT block-diagonal -- fwd weights in fwd gate lanes,
    # bwd weights in bwd gate lanes, applied to the same (un-duplicated) x.
    wih = interleave(params["w_ih_f"], params["w_ih_b"]).astype(jnp.bfloat16)
    bih = interleave(params["b_f"], params["b_b"]).astype(jnp.float32)

    # Recurrent weights: block-diagonal over the stacked [h_f | h_b] state.
    z_hh = jnp.zeros_like(params["w_hh_f"])
    whh = jnp.concatenate(
        [interleave(params["w_hh_f"], z_hh),
         interleave(z_hh, params["w_hh_b"])], axis=0).astype(jnp.bfloat16)

    w1 = params["w1"]
    Fh = w1.shape[1]
    w1m = w1[:2 * H, :].astype(jnp.bfloat16)             # (2H, F) matmul part
    w1x = w1[2 * H:2 * H + 1, :].astype(jnp.float32)     # (1, F)  x2 row
    b1 = params["b1"].astype(jnp.float32)

    # Zero-pad the final linear to a 128-lane output slab (lane-dense store).
    w2p = jnp.zeros((Fh, OUT_PAD), jnp.float32).at[:, :6].set(params["w2"])
    w2p = w2p.astype(jnp.bfloat16)
    b2p = jnp.zeros((1, OUT_PAD), jnp.float32).at[:, :6].set(params["b2"])

    return dict(embedding=params["embedding"].astype(jnp.float32),
                wih=wih, bih=bih, whh=whh,
                w1m=w1m, w1x=w1x, b1=b1, w2p=w2p, b2p=b2p)


def lstm_net_forward(packed, var_x, var_cr, var_x2, *, lstm_hidden):
    H = lstm_hidden
    # Plain-JAX glue: embedding gather + capital-ratio concat.
    emb = packed["embedding"][var_x]                      # (B, T, E)
    cr = var_cr[:, :, None].astype(jnp.float32)           # (B, T, 1)
    x = jnp.concatenate([emb, cr], axis=2)                # (B, T, E+1)
    B, T, Ein = x.shape

    # Pad batch to a sublane multiple so every per-step tile and the output
    # store are full, unmasked 8-sublane tiles.
    B_pad = ((B + 7) // 8) * 8
    x2 = var_x2.astype(jnp.float32)
    if B_pad != B:
        x = jnp.pad(x, ((0, B_pad - B), (0, 0), (0, 0)))
        x2 = jnp.pad(x2, ((0, B_pad - B), (0, 0)))

    # Time-major, flattened to (T*B_pad, Ein) -- x is NOT duplicated.
    xt = jnp.transpose(x, (1, 0, 2))                      # (T, B_pad, Ein)
    x_flat = xt.reshape(T * B_pad, Ein).astype(jnp.bfloat16)

    args = (x_flat, x2,
            packed["wih"], packed["bih"], packed["whh"],
            packed["w1m"], packed["w1x"], packed["b1"],
            packed["w2p"], packed["b2p"])

    vmem = pl.BlockSpec(memory_space=pltpu.MemorySpace.VMEM)
    # NOTE(v7x): at production batch/seq sizes, add a parallel grid over B
    # with (TILE_B, ...) BlockSpecs (dimension_semantics=("parallel",)) so
    # both TensorCores share the batch, and tile / bf16 the projection to fit
    # the 64 MiB VMEM.  NOTE(v5e/v6e): at large T*B set
    # pltpu.CompilerParams(vmem_limit_bytes=...) past the 16/32 MiB scoped
    # defaults.  At B=2 / T=8 a single grid-less call is optimal.
    out = pl.pallas_call(
        partial(lstm_net_kernel, hidden=H, seq_len=T, batch=B_pad),
        out_shape=jax.ShapeDtypeStruct((B_pad, OUT_PAD), jnp.float32),
        in_specs=[vmem] * len(args),
        out_specs=vmem,
    )(*args)
    return out[:B, :6]


def reference_forward(params, var_x, var_cr, var_x2, *, lstm_hidden):
    # Pure-JAX f32 reference mirroring the PyTorch forward (eval mode).
    H = lstm_hidden
    emb = params["embedding"][var_x]
    x = jnp.concatenate([emb, var_cr[:, :, None]], axis=2)
    B, T, _ = x.shape

    def run_dir(xs, wih, whh, b):
        def step(carry, x_t):
            h, c = carry
            gates = x_t @ wih + h @ whh + b
            i = jax.nn.sigmoid(gates[:, :H])
            f = jax.nn.sigmoid(gates[:, H:2 * H])
            g = jnp.tanh(gates[:, 2 * H:3 * H])
            o = jax.nn.sigmoid(gates[:, 3 * H:])
            c = f * c + i * g
            h = o * jnp.tanh(c)
            return (h, c), h
        (_, _), hs = lax.scan(step, (jnp.zeros((B, H)), jnp.zeros((B, H))), xs)
        return hs

    xs = jnp.transpose(x, (1, 0, 2))
    hf = run_dir(xs, params["w_ih_f"], params["w_hh_f"], params["b_f"][0])
    hb = run_dir(xs[::-1], params["w_ih_b"], params["w_hh_b"], params["b_b"][0])[::-1]
    out = jnp.concatenate([hf, hb], axis=2)  # (T, B, 2H)
    pooled = jnp.max(out, axis=0)            # (B, 2H)  == MaxPool2d((T,1))
    lin_in = jnp.concatenate([pooled, var_x2], axis=1)
    h1 = jax.nn.relu(lin_in @ params["w1"] + params["b1"][0])
    return jax.nn.sigmoid(h1 @ params["w2"] + params["b2"][0])


if __name__ == "__main__":
    vocab_size = 50
    embedding_dim = 16
    len_sentence = 8
    lstm_hidden = 32
    fcn_hidden = 64
    batch = 2
    padding_idx = 1

    E, H, F = embedding_dim, lstm_hidden, fcn_hidden

    key = jax.random.PRNGKey(0)
    keys = jax.random.split(key, 16)

    def nrm(k, shape, scale=0.1):
        return (scale * jax.random.normal(k, shape)).astype(jnp.float32)

    emb_tbl = nrm(keys[0], (vocab_size + 2, E))
    emb_tbl = emb_tbl.at[padding_idx].set(0.0)  # padding_idx row is zeros

    params = dict(
        embedding=emb_tbl,
        # PyTorch LSTM gate order [i, f, g, o]; combined b_ih + b_hh bias.
        w_ih_f=nrm(keys[1], (E + 1, 4 * H)),
        w_hh_f=nrm(keys[2], (H, 4 * H)),
        b_f=nrm(keys[3], (1, 4 * H)),
        w_ih_b=nrm(keys[4], (E + 1, 4 * H)),
        w_hh_b=nrm(keys[5], (H, 4 * H)),
        b_b=nrm(keys[6], (1, 4 * H)),
        w1=nrm(keys[7], (2 * H + 1, F)),
        b1=nrm(keys[8], (1, F)),
        w2=nrm(keys[9], (F, 6)),
        b2=nrm(keys[10], (1, 6)),
    )

    var_x = jax.random.randint(keys[11], (batch, len_sentence), 0,
                               vocab_size + 2, dtype=jnp.int32)
    var_cr = jax.random.uniform(keys[12], (batch, len_sentence),
                                dtype=jnp.float32)
    var_x2 = jax.random.uniform(keys[13], (batch, 1), dtype=jnp.float32)

    # One-time weight packing (input-independent), then a jitted forward.
    packed = jax.tree_util.tree_map(
        jax.block_until_ready, prepack_params(params, lstm_hidden=lstm_hidden))
    fwd = jax.jit(partial(lstm_net_forward, lstm_hidden=lstm_hidden))

    out = fwd(packed, var_x, var_cr, var_x2)
    out = jax.block_until_ready(out)

    ref = reference_forward(params, var_x, var_cr, var_x2,
                            lstm_hidden=lstm_hidden)
    assert out.shape == (batch, 6), out.shape
    # Tolerance accounts for bf16 matmul operands (f32 accumulation) in the
    # kernel vs. the all-f32 reference; outputs are sigmoid-bounded in [0,1].
    assert jnp.allclose(out, ref, rtol=2e-2, atol=2e-2), (out, ref)
    print("KERNEL_OK")
</pallas_src>

<mosaic_0001>
module attributes {stable_mosaic.version = 11 : i64} {
  func.func @lstm_net_kernel(%arg0: memref<64x17xbf16, #tpu.memory_space<vmem>>, %arg1: memref<8x1xf32, #tpu.memory_space<vmem>>, %arg2: memref<17x256xbf16, #tpu.memory_space<vmem>>, %arg3: memref<1x256xf32, #tpu.memory_space<vmem>>, %arg4: memref<64x256xbf16, #tpu.memory_space<vmem>>, %arg5: memref<64x64xbf16, #tpu.memory_space<vmem>>, %arg6: memref<1x64xf32, #tpu.memory_space<vmem>>, %arg7: memref<1x64xf32, #tpu.memory_space<vmem>>, %arg8: memref<64x128xbf16, #tpu.memory_space<vmem>>, %arg9: memref<1x128xf32, #tpu.memory_space<vmem>>, %arg10: memref<8x128xf32, #tpu.memory_space<vmem>>) attributes {dimension_semantics = [], scalar_prefetch = 0 : i64, scratch_operands = 0 : i64, tpu.core_type = #tpu.core_type<tc>} {
    %c0 = arith.constant 0 : index
    %c0_0 = arith.constant 0 : index
    %0 = vector.load %arg0[%c0, %c0_0] : memref<64x17xbf16, #tpu.memory_space<vmem>>, vector<64x17xbf16>
    %c0_1 = arith.constant 0 : index
    %c0_2 = arith.constant 0 : index
    %1 = vector.load %arg2[%c0_1, %c0_2] : memref<17x256xbf16, #tpu.memory_space<vmem>>, vector<17x256xbf16>
    %cst = arith.constant dense<0.000000e+00> : vector<64x256xf32>
    %2 = tpu.matmul %0, %1, %cst {dimension_numbers = #tpu.dot_dimension_numbers<[1], [0], [0], [1], [0, 0, 1, 1], [], []>} : vector<64x17xbf16>, vector<17x256xbf16>, vector<64x256xf32> -> vector<64x256xf32>
    %c0_3 = arith.constant 0 : index
    %c0_4 = arith.constant 0 : index
    %3 = vector.load %arg3[%c0_3, %c0_4] : memref<1x256xf32, #tpu.memory_space<vmem>>, vector<1x256xf32>
    %4 = vector.broadcast %3 : vector<1x256xf32> to vector<64x256xf32>
    %5 = arith.addf %2, %4 : vector<64x256xf32>
    %6 = tpu.iota {dimensions = array<i32: 1>} : vector<8x256xi32>
    %c64_i32 = arith.constant 64 : i32
    %c0_i32 = arith.constant 0 : i32
    %7 = arith.cmpi eq, %c64_i32, %c0_i32 : i32
    %c1_i32 = arith.constant 1 : i32
    %8 = arith.select %7, %c1_i32, %c64_i32 : i32
    %9 = vector.broadcast %8 : i32 to vector<8x256xi32>
    %10 = arith.remsi %6, %9 : vector<8x256xi32>
    %c0_i32_5 = arith.constant 0 : i32
    %11 = vector.broadcast %c0_i32_5 : i32 to vector<8x256xi32>
    %12 = arith.cmpi ne, %10, %11 : vector<8x256xi32>
    %c0_i32_6 = arith.constant 0 : i32
    %13 = vector.broadcast %c0_i32_6 : i32 to vector<8x256xi32>
    %14 = arith.cmpi slt, %10, %13 : vector<8x256xi32>
    %c0_i32_7 = arith.constant 0 : i32
    %15 = arith.cmpi slt, %8, %c0_i32_7 : i32
    %16 = vector.broadcast %15 : i1 to vector<8x256xi1>
    %17 = vector.broadcast %16 : vector<8x256xi1> to vector<8x256xi1>
    %18 = arith.xori %14, %17 : vector<8x256xi1>
    %19 = arith.andi %18, %12 : vector<8x256xi1>
    %20 = vector.broadcast %8 : i32 to vector<8x256xi32>
    %21 = arith.addi %10, %20 : vector<8x256xi32>
    %22 = arith.select %19, %21, %10 : vector<8x256xi1>, vector<8x256xi32>
    %c32_i32 = arith.constant 32 : i32
    %23 = vector.broadcast %c32_i32 : i32 to vector<8x256xi32>
    %24 = arith.cmpi slt, %22, %23 : vector<8x256xi32>
    %c0_8 = arith.constant 0 : index
    %c0_9 = arith.constant 0 : index
    %25 = vector.load %arg4[%c0_8, %c0_9] : memref<64x256xbf16, #tpu.memory_space<vmem>>, vector<64x256xbf16>
    %cst_10 = arith.constant 0.000000e+00 : f32
    %26 = vector.broadcast %cst_10 : f32 to vector<8x64xf32>
    %27 = vector.extract_strided_slice %5 {offsets = [0, 0], sizes = [8, 256], strides = [1, 1]} : vector<64x256xf32> to vector<8x256xf32>
    %28 = vector.extract_strided_slice %5 {offsets = [56, 0], sizes = [8, 256], strides = [1, 1]} : vector<64x256xf32> to vector<8x256xf32>
    %29 = arith.select %24, %27, %28 : vector<8x256xi1>, vector<8x256xf32>
    %30 = arith.truncf %26 : vector<8x64xf32> to vector<8x64xbf16>
    %cst_11 = arith.constant dense<0.000000e+00> : vector<8x256xf32>
    %31 = tpu.matmul %30, %25, %cst_11 {dimension_numbers = #tpu.dot_dimension_numbers<[1], [0], [0], [1], [0, 0, 1, 1], [], []>} : vector<8x64xbf16>, vector<64x256xbf16>, vector<8x256xf32> -> vector<8x256xf32>
    %32 = arith.addf %29, %31 : vector<8x256xf32>
    %33 = arith.negf %32 : vector<8x256xf32>
    %34 = math.exp %33 : vector<8x256xf32>
    %cst_12 = arith.constant 1.000000e+00 : f32
    %35 = vector.broadcast %cst_12 : f32 to vector<8x256xf32>
    %36 = arith.addf %35, %34 : vector<8x256xf32>
    %37 = arith.divf %35, %36 : vector<8x256xf32>
    %38 = vector.extract_strided_slice %32 {offsets = [0, 128], sizes = [8, 128], strides = [1, 1]} : vector<8x256xf32> to vector<8x128xf32>
    %39 = math.tanh %38 : vector<8x128xf32>
    %40 = vector.extract_strided_slice %37 {offsets = [0, 0], sizes = [8, 64], strides = [1, 1]} : vector<8x256xf32> to vector<8x64xf32>
    %41 = vector.extract_strided_slice %37 {offsets = [0, 64], sizes = [8, 64], strides = [1, 1]} : vector<8x256xf32> to vector<8x64xf32>
    %42 = vector.extract_strided_slice %39 {offsets = [0, 0], sizes = [8, 64], strides = [1, 1]} : vector<8x128xf32> to vector<8x64xf32>
    %43 = vector.extract_strided_slice %37 {offsets = [0, 192], sizes = [8, 64], strides = [1, 1]} : vector<8x256xf32> to vector<8x64xf32>
    %44 = arith.mulf %41, %26 : vector<8x64xf32>
    %45 = arith.mulf %40, %42 : vector<8x64xf32>
    %46 = arith.addf %44, %45 : vector<8x64xf32>
    %47 = math.tanh %46 : vector<8x64xf32>
    %48 = arith.mulf %43, %47 : vector<8x64xf32>
    %49 = vector.extract_strided_slice %5 {offsets = [8, 0], sizes = [8, 256], strides = [1, 1]} : vector<64x256xf32> to vector<8x256xf32>
    %50 = vector.extract_strided_slice %5 {offsets = [48, 0], sizes = [8, 256], strides = [1, 1]} : vector<64x256xf32> to vector<8x256xf32>
    %51 = arith.select %24, %49, %50 : vector<8x256xi1>, vector<8x256xf32>
    %52 = arith.truncf %48 : vector<8x64xf32> to vector<8x64xbf16>
    %cst_13 = arith.constant dense<0.000000e+00> : vector<8x256xf32>
    %53 = tpu.matmul %52, %25, %cst_13 {dimension_numbers = #tpu.dot_dimension_numbers<[1], [0], [0], [1], [0, 0, 1, 1], [], []>} : vector<8x64xbf16>, vector<64x256xbf16>, vector<8x256xf32> -> vector<8x256xf32>
    %54 = arith.addf %51, %53 : vector<8x256xf32>
    %55 = arith.negf %54 : vector<8x256xf32>
    %56 = math.exp %55 : vector<8x256xf32>
    %cst_14 = arith.constant 1.000000e+00 : f32
    %57 = vector.broadcast %cst_14 : f32 to vector<8x256xf32>
    %58 = arith.addf %57, %56 : vector<8x256xf32>
    %59 = arith.divf %57, %58 : vector<8x256xf32>
    %60 = vector.extract_strided_slice %54 {offsets = [0, 128], sizes = [8, 128], strides = [1, 1]} : vector<8x256xf32> to vector<8x128xf32>
    %61 = math.tanh %60 : vector<8x128xf32>
    %62 = vector.extract_strided_slice %59 {offsets = [0, 0], sizes = [8, 64], strides = [1, 1]} : vector<8x256xf32> to vector<8x64xf32>
    %63 = vector.extract_strided_slice %59 {offsets = [0, 64], sizes = [8, 64], strides = [1, 1]} : vector<8x256xf32> to vector<8x64xf32>
    %64 = vector.extract_strided_slice %61 {offsets = [0, 0], sizes = [8, 64], strides = [1, 1]} : vector<8x128xf32> to vector<8x64xf32>
    %65 = vector.extract_strided_slice %59 {offsets = [0, 192], sizes = [8, 64], strides = [1, 1]} : vector<8x256xf32> to vector<8x64xf32>
    %66 = arith.mulf %63, %46 : vector<8x64xf32>
    %67 = arith.mulf %62, %64 : vector<8x64xf32>
    %68 = arith.addf %66, %67 : vector<8x64xf32>
    %69 = math.tanh %68 : vector<8x64xf32>
    %70 = arith.mulf %65, %69 : vector<8x64xf32>
    %71 = arith.maximumf %48, %70 : vector<8x64xf32>
    %72 = vector.extract_strided_slice %5 {offsets = [16, 0], sizes = [8, 256], strides = [1, 1]} : vector<64x256xf32> to vector<8x256xf32>
    %73 = vector.extract_strided_slice %5 {offsets = [40, 0], sizes = [8, 256], strides = [1, 1]} : vector<64x256xf32> to vector<8x256xf32>
    %74 = arith.select %24, %72, %73 : vector<8x256xi1>, vector<8x256xf32>
    %75 = arith.truncf %70 : vector<8x64xf32> to vector<8x64xbf16>
    %cst_15 = arith.constant dense<0.000000e+00> : vector<8x256xf32>
    %76 = tpu.matmul %75, %25, %cst_15 {dimension_numbers = #tpu.dot_dimension_numbers<[1], [0], [0], [1], [0, 0, 1, 1], [], []>} : vector<8x64xbf16>, vector<64x256xbf16>, vector<8x256xf32> -> vector<8x256xf32>
    %77 = arith.addf %74, %76 : vector<8x256xf32>
    %78 = arith.negf %77 : vector<8x256xf32>
    %79 = math.exp %78 : vector<8x256xf32>
    %cst_16 = arith.constant 1.000000e+00 : f32
    %80 = vector.broadcast %cst_16 : f32 to vector<8x256xf32>
    %81 = arith.addf %80, %79 : vector<8x256xf32>
    %82 = arith.divf %80, %81 : vector<8x256xf32>
    %83 = vector.extract_strided_slice %77 {offsets = [0, 128], sizes = [8, 128], strides = [1, 1]} : vector<8x256xf32> to vector<8x128xf32>
    %84 = math.tanh %83 : vector<8x128xf32>
    %85 = vector.extract_strided_slice %82 {offsets = [0, 0], sizes = [8, 64], strides = [1, 1]} : vector<8x256xf32> to vector<8x64xf32>
    %86 = vector.extract_strided_slice %82 {offsets = [0, 64], sizes = [8, 64], strides = [1, 1]} : vector<8x256xf32> to vector<8x64xf32>
    %87 = vector.extract_strided_slice %84 {offsets = [0, 0], sizes = [8, 64], strides = [1, 1]} : vector<8x128xf32> to vector<8x64xf32>
    %88 = vector.extract_strided_slice %82 {offsets = [0, 192], sizes = [8, 64], strides = [1, 1]} : vector<8x256xf32> to vector<8x64xf32>
    %89 = arith.mulf %86, %68 : vector<8x64xf32>
    %90 = arith.mulf %85, %87 : vector<8x64xf32>
    %91 = arith.addf %89, %90 : vector<8x64xf32>
    %92 = math.tanh %91 : vector<8x64xf32>
    %93 = arith.mulf %88, %92 : vector<8x64xf32>
    %94 = arith.maximumf %71, %93 : vector<8x64xf32>
    %95 = vector.extract_strided_slice %5 {offsets = [24, 0], sizes = [8, 256], strides = [1, 1]} : vector<64x256xf32> to vector<8x256xf32>
    %96 = vector.extract_strided_slice %5 {offsets = [32, 0], sizes = [8, 256], strides = [1, 1]} : vector<64x256xf32> to vector<8x256xf32>
    %97 = arith.select %24, %95, %96 : vector<8x256xi1>, vector<8x256xf32>
    %98 = arith.truncf %93 : vector<8x64xf32> to vector<8x64xbf16>
    %cst_17 = arith.constant dense<0.000000e+00> : vector<8x256xf32>
    %99 = tpu.matmul %98, %25, %cst_17 {dimension_numbers = #tpu.dot_dimension_numbers<[1], [0], [0], [1], [0, 0, 1, 1], [], []>} : vector<8x64xbf16>, vector<64x256xbf16>, vector<8x256xf32> -> vector<8x256xf32>
    %100 = arith.addf %97, %99 : vector<8x256xf32>
    %101 = arith.negf %100 : vector<8x256xf32>
    %102 = math.exp %101 : vector<8x256xf32>
    %cst_18 = arith.constant 1.000000e+00 : f32
    %103 = vector.broadcast %cst_18 : f32 to vector<8x256xf32>
    %104 = arith.addf %103, %102 : vector<8x256xf32>
    %105 = arith.divf %103, %104 : vector<8x256xf32>
    %106 = vector.extract_strided_slice %100 {offsets = [0, 128], sizes = [8, 128], strides = [1, 1]} : vector<8x256xf32> to vector<8x128xf32>
    %107 = math.tanh %106 : vector<8x128xf32>
    %108 = vector.extract_strided_slice %105 {offsets = [0, 0], sizes = [8, 64], strides = [1, 1]} : vector<8x256xf32> to vector<8x64xf32>
    %109 = vector.extract_strided_slice %105 {offsets = [0, 64], sizes = [8, 64], strides = [1, 1]} : vector<8x256xf32> to vector<8x64xf32>
    %110 = vector.extract_strided_slice %107 {offsets = [0, 0], sizes = [8, 64], strides = [1, 1]} : vector<8x128xf32> to vector<8x64xf32>
    %111 = vector.extract_strided_slice %105 {offsets = [0, 192], sizes = [8, 64], strides = [1, 1]} : vector<8x256xf32> to vector<8x64xf32>
    %112 = arith.mulf %109, %91 : vector<8x64xf32>
    %113 = arith.mulf %108, %110 : vector<8x64xf32>
    %114 = arith.addf %112, %113 : vector<8x64xf32>
    %115 = math.tanh %114 : vector<8x64xf32>
    %116 = arith.mulf %111, %115 : vector<8x64xf32>
    %117 = arith.maximumf %94, %116 : vector<8x64xf32>
    %118 = vector.extract_strided_slice %5 {offsets = [32, 0], sizes = [8, 256], strides = [1, 1]} : vector<64x256xf32> to vector<8x256xf32>
    %119 = vector.extract_strided_slice %5 {offsets = [24, 0], sizes = [8, 256], strides = [1, 1]} : vector<64x256xf32> to vector<8x256xf32>
    %120 = arith.select %24, %118, %119 : vector<8x256xi1>, vector<8x256xf32>
    %121 = arith.truncf %116 : vector<8x64xf32> to vector<8x64xbf16>
    %cst_19 = arith.constant dense<0.000000e+00> : vector<8x256xf32>
    %122 = tpu.matmul %121, %25, %cst_19 {dimension_numbers = #tpu.dot_dimension_numbers<[1], [0], [0], [1], [0, 0, 1, 1], [], []>} : vector<8x64xbf16>, vector<64x256xbf16>, vector<8x256xf32> -> vector<8x256xf32>
    %123 = arith.addf %120, %122 : vector<8x256xf32>
    %124 = arith.negf %123 : vector<8x256xf32>
    %125 = math.exp %124 : vector<8x256xf32>
    %cst_20 = arith.constant 1.000000e+00 : f32
    %126 = vector.broadcast %cst_20 : f32 to vector<8x256xf32>
    %127 = arith.addf %126, %125 : vector<8x256xf32>
    %128 = arith.divf %126, %127 : vector<8x256xf32>
    %129 = vector.extract_strided_slice %123 {offsets = [0, 128], sizes = [8, 128], strides = [1, 1]} : vector<8x256xf32> to vector<8x128xf32>
    %130 = math.tanh %129 : vector<8x128xf32>
    %131 = vector.extract_strided_slice %128 {offsets = [0, 0], sizes = [8, 64], strides = [1, 1]} : vector<8x256xf32> to vector<8x64xf32>
    %132 = vector.extract_strided_slice %128 {offsets = [0, 64], sizes = [8, 64], strides = [1, 1]} : vector<8x256xf32> to vector<8x64xf32>
    %133 = vector.extract_strided_slice %130 {offsets = [0, 0], sizes = [8, 64], strides = [1, 1]} : vector<8x128xf32> to vector<8x64xf32>
    %134 = vector.extract_strided_slice %128 {offsets = [0, 192], sizes = [8, 64], strides = [1, 1]} : vector<8x256xf32> to vector<8x64xf32>
    %135 = arith.mulf %132, %114 : vector<8x64xf32>
    %136 = arith.mulf %131, %133 : vector<8x64xf32>
    %137 = arith.addf %135, %136 : vector<8x64xf32>
    %138 = math.tanh %137 : vector<8x64xf32>
    %139 = arith.mulf %134, %138 : vector<8x64xf32>
    %140 = arith.maximumf %117, %139 : vector<8x64xf32>
    %141 = vector.extract_strided_slice %5 {offsets = [40, 0], sizes = [8, 256], strides = [1, 1]} : vector<64x256xf32> to vector<8x256xf32>
    %142 = vector.extract_strided_slice %5 {offsets = [16, 0], sizes = [8, 256], strides = [1, 1]} : vector<64x256xf32> to vector<8x256xf32>
    %143 = arith.select %24, %141, %142 : vector<8x256xi1>, vector<8x256xf32>
    %144 = arith.truncf %139 : vector<8x64xf32> to vector<8x64xbf16>
    %cst_21 = arith.constant dense<0.000000e+00> : vector<8x256xf32>
    %145 = tpu.matmul %144, %25, %cst_21 {dimension_numbers = #tpu.dot_dimension_numbers<[1], [0], [0], [1], [0, 0, 1, 1], [], []>} : vector<8x64xbf16>, vector<64x256xbf16>, vector<8x256xf32> -> vector<8x256xf32>
    %146 = arith.addf %143, %145 : vector<8x256xf32>
    %147 = arith.negf %146 : vector<8x256xf32>
    %148 = math.exp %147 : vector<8x256xf32>
    %cst_22 = arith.constant 1.000000e+00 : f32
    %149 = vector.broadcast %cst_22 : f32 to vector<8x256xf32>
    %150 = arith.addf %149, %148 : vector<8x256xf32>
    %151 = arith.divf %149, %150 : vector<8x256xf32>
    %152 = vector.extract_strided_slice %146 {offsets = [0, 128], sizes = [8, 128], strides = [1, 1]} : vector<8x256xf32> to vector<8x128xf32>
    %153 = math.tanh %152 : vector<8x128xf32>
    %154 = vector.extract_strided_slice %151 {offsets = [0, 0], sizes = [8, 64], strides = [1, 1]} : vector<8x256xf32> to vector<8x64xf32>
    %155 = vector.extract_strided_slice %151 {offsets = [0, 64], sizes = [8, 64], strides = [1, 1]} : vector<8x256xf32> to vector<8x64xf32>
    %156 = vector.extract_strided_slice %153 {offsets = [0, 0], sizes = [8, 64], strides = [1, 1]} : vector<8x128xf32> to vector<8x64xf32>
    %157 = vector.extract_strided_slice %151 {offsets = [0, 192], sizes = [8, 64], strides = [1, 1]} : vector<8x256xf32> to vector<8x64xf32>
    %158 = arith.mulf %155, %137 : vector<8x64xf32>
    %159 = arith.mulf %154, %156 : vector<8x64xf32>
    %160 = arith.addf %158, %159 : vector<8x64xf32>
    %161 = math.tanh %160 : vector<8x64xf32>
    %162 = arith.mulf %157, %161 : vector<8x64xf32>
    %163 = arith.maximumf %140, %162 : vector<8x64xf32>
    %164 = vector.extract_strided_slice %5 {offsets = [48, 0], sizes = [8, 256], strides = [1, 1]} : vector<64x256xf32> to vector<8x256xf32>
    %165 = vector.extract_strided_slice %5 {offsets = [8, 0], sizes = [8, 256], strides = [1, 1]} : vector<64x256xf32> to vector<8x256xf32>
    %166 = arith.select %24, %164, %165 : vector<8x256xi1>, vector<8x256xf32>
    %167 = arith.truncf %162 : vector<8x64xf32> to vector<8x64xbf16>
    %cst_23 = arith.constant dense<0.000000e+00> : vector<8x256xf32>
    %168 = tpu.matmul %167, %25, %cst_23 {dimension_numbers = #tpu.dot_dimension_numbers<[1], [0], [0], [1], [0, 0, 1, 1], [], []>} : vector<8x64xbf16>, vector<64x256xbf16>, vector<8x256xf32> -> vector<8x256xf32>
    %169 = arith.addf %166, %168 : vector<8x256xf32>
    %170 = arith.negf %169 : vector<8x256xf32>
    %171 = math.exp %170 : vector<8x256xf32>
    %cst_24 = arith.constant 1.000000e+00 : f32
    %172 = vector.broadcast %cst_24 : f32 to vector<8x256xf32>
    %173 = arith.addf %172, %171 : vector<8x256xf32>
    %174 = arith.divf %172, %173 : vector<8x256xf32>
    %175 = vector.extract_strided_slice %169 {offsets = [0, 128], sizes = [8, 128], strides = [1, 1]} : vector<8x256xf32> to vector<8x128xf32>
    %176 = math.tanh %175 : vector<8x128xf32>
    %177 = vector.extract_strided_slice %174 {offsets = [0, 0], sizes = [8, 64], strides = [1, 1]} : vector<8x256xf32> to vector<8x64xf32>
    %178 = vector.extract_strided_slice %174 {offsets = [0, 64], sizes = [8, 64], strides = [1, 1]} : vector<8x256xf32> to vector<8x64xf32>
    %179 = vector.extract_strided_slice %176 {offsets = [0, 0], sizes = [8, 64], strides = [1, 1]} : vector<8x128xf32> to vector<8x64xf32>
    %180 = vector.extract_strided_slice %174 {offsets = [0, 192], sizes = [8, 64], strides = [1, 1]} : vector<8x256xf32> to vector<8x64xf32>
    %181 = arith.mulf %178, %160 : vector<8x64xf32>
    %182 = arith.mulf %177, %179 : vector<8x64xf32>
    %183 = arith.addf %181, %182 : vector<8x64xf32>
    %184 = math.tanh %183 : vector<8x64xf32>
    %185 = arith.mulf %180, %184 : vector<8x64xf32>
    %186 = arith.maximumf %163, %185 : vector<8x64xf32>
    %187 = vector.extract_strided_slice %5 {offsets = [56, 0], sizes = [8, 256], strides = [1, 1]} : vector<64x256xf32> to vector<8x256xf32>
    %188 = vector.extract_strided_slice %5 {offsets = [0, 0], sizes = [8, 256], strides = [1, 1]} : vector<64x256xf32> to vector<8x256xf32>
    %189 = arith.select %24, %187, %188 : vector<8x256xi1>, vector<8x256xf32>
    %190 = arith.truncf %185 : vector<8x64xf32> to vector<8x64xbf16>
    %cst_25 = arith.constant dense<0.000000e+00> : vector<8x256xf32>
    %191 = tpu.matmul %190, %25, %cst_25 {dimension_numbers = #tpu.dot_dimension_numbers<[1], [0], [0], [1], [0, 0, 1, 1], [], []>} : vector<8x64xbf16>, vector<64x256xbf16>, vector<8x256xf32> -> vector<8x256xf32>
    %192 = arith.addf %189, %191 : vector<8x256xf32>
    %193 = arith.negf %192 : vector<8x256xf32>
    %194 = math.exp %193 : vector<8x256xf32>
    %cst_26 = arith.constant 1.000000e+00 : f32
    %195 = vector.broadcast %cst_26 : f32 to vector<8x256xf32>
    %196 = arith.addf %195, %194 : vector<8x256xf32>
    %197 = arith.divf %195, %196 : vector<8x256xf32>
    %198 = vector.extract_strided_slice %192 {offsets = [0, 128], sizes = [8, 128], strides = [1, 1]} : vector<8x256xf32> to vector<8x128xf32>
    %199 = math.tanh %198 : vector<8x128xf32>
    %200 = vector.extract_strided_slice %197 {offsets = [0, 0], sizes = [8, 64], strides = [1, 1]} : vector<8x256xf32> to vector<8x64xf32>
    %201 = vector.extract_strided_slice %197 {offsets = [0, 64], sizes = [8, 64], strides = [1, 1]} : vector<8x256xf32> to vector<8x64xf32>
    %202 = vector.extract_strided_slice %199 {offsets = [0, 0], sizes = [8, 64], strides = [1, 1]} : vector<8x128xf32> to vector<8x64xf32>
    %203 = vector.extract_strided_slice %197 {offsets = [0, 192], sizes = [8, 64], strides = [1, 1]} : vector<8x256xf32> to vector<8x64xf32>
    %204 = arith.mulf %201, %183 : vector<8x64xf32>
    %205 = arith.mulf %200, %202 : vector<8x64xf32>
    %206 = arith.addf %204, %205 : vector<8x64xf32>
    %207 = math.tanh %206 : vector<8x64xf32>
    %208 = arith.mulf %203, %207 : vector<8x64xf32>
    %209 = arith.maximumf %186, %208 : vector<8x64xf32>
    %210 = arith.truncf %209 : vector<8x64xf32> to vector<8x64xbf16>
    %c0_27 = arith.constant 0 : index
    %c0_28 = arith.constant 0 : index
    %211 = vector.load %arg5[%c0_27, %c0_28] : memref<64x64xbf16, #tpu.memory_space<vmem>>, vector<64x64xbf16>
    %cst_29 = arith.constant dense<0.000000e+00> : vector<8x64xf32>
    %212 = tpu.matmul %210, %211, %cst_29 {dimension_numbers = #tpu.dot_dimension_numbers<[1], [0], [0], [1], [0, 0, 1, 1], [], []>} : vector<8x64xbf16>, vector<64x64xbf16>, vector<8x64xf32> -> vector<8x64xf32>
    %c0_30 = arith.constant 0 : index
    %c0_31 = arith.constant 0 : index
    %213 = vector.load %arg1[%c0_30, %c0_31] : memref<8x1xf32, #tpu.memory_space<vmem>>, vector<8x1xf32>
    %c0_32 = arith.constant 0 : index
    %c0_33 = arith.constant 0 : index
    %214 = vector.load %arg6[%c0_32, %c0_33] : memref<1x64xf32, #tpu.memory_space<vmem>>, vector<1x64xf32>
    %215 = vector.broadcast %213 : vector<8x1xf32> to vector<8x64xf32>
    %216 = vector.broadcast %214 : vector<1x64xf32> to vector<8x64xf32>
    %217 = arith.mulf %215, %216 : vector<8x64xf32>
    %218 = arith.addf %212, %217 : vector<8x64xf32>
    %c0_34 = arith.constant 0 : index
    %c0_35 = arith.constant 0 : index
    %219 = vector.load %arg7[%c0_34, %c0_35] : memref<1x64xf32, #tpu.memory_space<vmem>>, vector<1x64xf32>
    %220 = vector.broadcast %219 : vector<1x64xf32> to vector<8x64xf32>
    %221 = arith.addf %218, %220 : vector<8x64xf32>
    %cst_36 = arith.constant 0.000000e+00 : f32
    %222 = vector.broadcast %cst_36 : f32 to vector<8x64xf32>
    %223 = arith.maximumf %221, %222 : vector<8x64xf32>
    %224 = arith.truncf %223 : vector<8x64xf32> to vector<8x64xbf16>
    %c0_37 = arith.constant 0 : index
    %c0_38 = arith.constant 0 : index
    %225 = vector.load %arg8[%c0_37, %c0_38] : memref<64x128xbf16, #tpu.memory_space<vmem>>, vector<64x128xbf16>
    %cst_39 = arith.constant dense<0.000000e+00> : vector<8x128xf32>
    %226 = tpu.matmul %224, %225, %cst_39 {dimension_numbers = #tpu.dot_dimension_numbers<[1], [0], [0], [1], [0, 0, 1, 1], [], []>} : vector<8x64xbf16>, vector<64x128xbf16>, vector<8x128xf32> -> vector<8x128xf32>
    %c0_40 = arith.constant 0 : index
    %c0_41 = arith.constant 0 : index
    %227 = vector.load %arg9[%c0_40, %c0_41] : memref<1x128xf32, #tpu.memory_space<vmem>>, vector<1x128xf32>
    %228 = vector.broadcast %227 : vector<1x128xf32> to vector<8x128xf32>
    %229 = arith.addf %226, %228 : vector<8x128xf32>
    %230 = arith.negf %229 : vector<8x128xf32>
    %231 = math.exp %230 : vector<8x128xf32>
    %cst_42 = arith.constant 1.000000e+00 : f32
    %232 = vector.broadcast %cst_42 : f32 to vector<8x128xf32>
    %233 = arith.addf %232, %231 : vector<8x128xf32>
    %234 = arith.divf %232, %233 : vector<8x128xf32>
    %c0_43 = arith.constant 0 : index
    %c0_44 = arith.constant 0 : index
    %235 = vector.load %arg10[%c0_43, %c0_44] : memref<8x128xf32, #tpu.memory_space<vmem>>, vector<8x128xf32>
    tpu.vector_store %arg10[%c0_43, %c0_44], %234 {strides = array<i32>} : memref<8x128xf32, #tpu.memory_space<vmem>>, vector<8x128xf32>,
    return
  }
}

</mosaic_0001>

<bundles_post_ra>
// kernel: lstm_net_forward.1
= control target key start
LH: loop header
LB: loop body
LE: loop exit
PB: predicated region body
PF: predicated region fallthrough
CT: control target
= control target key end

     0   :  { %vm101_vm0 = vcmask 1040384   ;;  %v1333_v1 = vmov 0   ;;  %vm88_vm1 = vcmask 138240   ;;  %v168_v56 = vlaneseq  ;;  %s1851_s2 = inlined_call_operand.vmem [shape: bf16[17,256], index: 2, kind: input, shape index: {}]   ;;  %s1852_s4 = inlined_call_operand.vmem [shape: bf16[64,256], index: 4, kind: input, shape index: {}]   ;;  %s1853_s0 = inlined_call_operand.vmem [shape: bf16[64,17], index: 0, kind: input, shape index: {}]   ;;  %s1854_s3 = inlined_call_operand.vmem [shape: f32[1,256], index: 3, kind: input, shape index: {}]   ;;  %s1855_s5 = inlined_call_operand.vmem [shape: bf16[64,64], index: 5, kind: input, shape index: {}]   ;;  %s1856_s6 = inlined_call_operand.vmem [shape: f32[1,64], index: 6, kind: input, shape index: {}]   ;;  %s1857_s7 = inlined_call_operand.vmem [shape: f32[1,64], index: 7, kind: input, shape index: {}]   ;;  %s1858_s1 = inlined_call_operand.vmem [shape: f32[8,1], index: 1, kind: input, shape index: {}]   ;;  %s1859_s8 = inlined_call_operand.vmem [shape: bf16[64,128], index: 8, kind: input, shape index: {}]   ;;  %s1860_s9 = inlined_call_operand.vmem [shape: f32[1,128], index: 9, kind: input, shape index: {}]   ;;  %s1861_s10 = inlined_call_operand.vmem [shape: f32[8,128], index: 10, kind: output, shape index: {}]  }
   0x1   :  { %v46_v0 = vld [vmem:[%s1851_s2 + $0x10] sm:$0x11]  ;;  %1228 = vset.pattern.permute.xlu1 %v1333_v1  ;;  %1229 = vset.pattern.permute.xlu0 %v1333_v1  ;;  %v103_v4 = vsel %vm101_vm0, 65535, %v1333_v1  ;;  %v1217_v6 = vld [vmem:[%s1852_s4 + $0x34] sm:$0xf0]  ;;  %v1204_v18 = vld [vmem:[%s1853_s0] sm:$0xff] }
   0x2   :  { %v80_v2 = vunpack.c.l.b16 %v46_v0  ;;  %v81_v3 = vunpack.c.h.b16 %v46_v0  ;;  %v1133_v5 = vld [vmem:[%s1852_s4 + $0x30] sm:$0xf]  ;;  %v1093_v9 = vld [vmem:[%s1851_s2] sm:$0xf]  ;;  %v1209_v11 = vld [vmem:[%s1851_s2 + $0x4] sm:$0xf0] }
   0x3   :  { %v1405_v10 = vor.u32 %v1217_v6, %v1133_v5  ;;  %v1208_v12 = vld [vmem:[%s1851_s2 + $0x4] sm:$0xf]  ;;  %v1095_v13 = vld [vmem:[%s1851_s2 + $0x8] sm:$0xf0]  ;;  %v1094_v16 = vor.u32 %v1209_v11, %v1093_v9  ;;  %v1125_v19 = vld [vmem:[%s1852_s4 + $0x20] sm:$0xf] }
   0x4   :  { %v84_v7 = vpack.c.b16 %v80_v2, %v80_v2  ;;  %v85_v8 = vpack.c.b16 %v81_v3, %v81_v3  ;;  %v1098_v17 = vor.u32 %v1208_v12, %v1095_v13  ;;  %v1215_v20 = vld [vmem:[%s1852_s4 + $0x24] sm:$0xf0]  ;;  %v1117_v22 = vld [vmem:[%s1852_s4 + $0x10] sm:$0xf]  ;;  %v1213_v23 = vld [vmem:[%s1852_s4 + $0x14] sm:$0xf0] }
   0x5   :  { %255 = vmatpush.bf16.msra.mxu2 %v1405_v10  ;;  %v1429_v21 = vor.u32 %v1215_v20, %v1125_v19  ;;  %v1216_v24 = vld [vmem:[%s1852_s4 + $0x34] sm:$0xf]  ;;  %v1135_v25 = vld [vmem:[%s1852_s4 + $0x38] sm:$0xf0]  ;;  %v1444_v26 = vor.u32 %v1213_v23, %v1117_v22  ;;  %v1214_v28 = vld [vmem:[%s1852_s4 + $0x24] sm:$0xf] }
   0x6   :  { %v105_v14 = vand.u32 %v103_v4, %v84_v7  ;;  %v108_v15 = vand.u32 %v103_v4, %v85_v8  ;;  %v1446_v27 = vor.u32 %v1216_v24, %v1135_v25  ;;  %v1127_v29 = vld [vmem:[%s1852_s4 + $0x28] sm:$0xf0]  ;;  %v1109_v30 = vld [vmem:[%s1852_s4] sm:$0xf]  ;;  %v1211_v31 = vld [vmem:[%s1852_s4 + $0x4] sm:$0xf0] }
   0x7   :  { %v1462_v32 = vor.u32 %v1214_v28, %v1127_v29  ;;  %v1212_v33 = vld [vmem:[%s1852_s4 + $0x14] sm:$0xf]  ;;  %v1119_v34 = vld [vmem:[%s1852_s4 + $0x18] sm:$0xf0]  ;;  %v1472_v35 = vor.u32 %v1211_v31, %v1109_v30  ;;  %v1205_v37 = vld [vmem:[%s1853_s0 + $0x8] sm:$0xff]  ;;  %v169_v58 = vand.u32 127, %v168_v56 }
   0x8   :  { %116 = vmatpush.bf16.msra.mxu0 %v105_v14  ;;  %145 = vmatpush.bf16.msra.mxu1 %v108_v15  ;;  %v1476_v36 = vor.u32 %v1212_v33, %v1119_v34  ;;  %v1210_v38 = vld [vmem:[%s1852_s4 + $0x4] sm:$0xf]  ;;  %v1111_v39 = vld [vmem:[%s1852_s4 + $0x8] sm:$0xf0]  ;;  %v1206_v41 = vld [vmem:[%s1853_s0 + $0x10] sm:$0xff]  ;;  %vm247_vm12 = vcmask 523264  }
   0x9   :  { %256 = vmatpush.bf16.msra.mxu2 %v1429_v21  ;;  %268 = vmatpush.bf16.msra.mxu3 %v1446_v27  ;;  %v1499_v40 = vor.u32 %v1210_v38, %v1111_v39  ;;  %v1207_v42 = vld [vmem:[%s1853_s0 + $0x18] sm:$0xff]  ;;  %v47_v45 = vld [vmem:[%s1854_s3] sm:$0x3]  ;;  %v170_v61 = vadd.s32 128, %v169_v58  ;;  %v175_v2 = vand.u32 63, %v169_v58  ;;  %s1334_s0 = smov 64  }
   0xa   :  { %v50_v46 = vperm.slane %v47_v45, 1  ;;  %v49_v47 = vperm.slane %v47_v45, 0 }
   0xb   :  { %v182_v3 = vand.u32 63, %v170_v61  ;;  %vm1549_vm2 = vcmp.lt.s32.totalorder %v175_v2, 32 }
   0xc   :  { %117 = vmatpush.bf16.msra.mxu0 %v1094_v16  ;;  %146 = vmatpush.bf16.msra.mxu1 %v1098_v17 }
   0xd   :  { %257 = vmatpush.bf16.msra.mxu2 %v1444_v26  ;;  %269 = vmatpush.bf16.msra.mxu3 %v1462_v32  ;;  %vm1553_vm3 = vcmp.lt.s32.totalorder %v182_v3, 32 }
   0xf   :  { %1099 = vmatmul.msk.bf16.vlgmr.msra.gmra.mxu0 %vm88_vm1, %v1204_v18  ;;  %1103 = vmatmul.msk.bf16.vlgmr.msra.gmra.mxu1 %vm88_vm1, %v1204_v18 }
  0x10   :  { %598 = vmatpush.bf16.msrb.mxu0 %v1405_v10  ;;  %611 = vmatpush.bf16.msrb.mxu1 %v1446_v27 }
  0x11   :  { %258 = vmatpush.bf16.msra.mxu2 %v1472_v35  ;;  %270 = vmatpush.bf16.msra.mxu3 %v1476_v36 }
  0x14   :  { %599 = vmatpush.bf16.msrb.mxu0 %v1429_v21  ;;  %612 = vmatpush.bf16.msrb.mxu1 %v1462_v32 }
  0x15   :  { %340 = vmatpush.bf16.msrb.mxu2 %v1405_v10  ;;  %271 = vmatpush.bf16.msra.mxu3 %v1499_v40 }
  0x16   :  { %259 = vmatmul.bf16.vlgmr.msra.gmra.mxu2 %v1333_v1 }
  0x18   :  { %600 = vmatpush.bf16.msrb.mxu0 %v1444_v26  ;;  %613 = vmatpush.bf16.msrb.mxu1 %v1476_v36 }
  0x19   :  { %341 = vmatpush.bf16.msrb.mxu2 %v1429_v21  ;;  %353 = vmatpush.bf16.msrb.mxu3 %v1446_v27 }
  0x1a   :  { %272 = vmatmul.bf16.vlgmr.msra.gmra.mxu3 %v1333_v1 }
  0x1c   :  { %601 = vmatpush.bf16.msrb.mxu0 %v1472_v35  ;;  %614 = vmatpush.bf16.msrb.mxu1 %v1499_v40 }
  0x1d   :  { %342 = vmatpush.bf16.msrb.mxu2 %v1444_v26  ;;  %354 = vmatpush.bf16.msrb.mxu3 %v1462_v32 }
  0x1f   :  { %1100 = vmatmul.msk.bf16.gmra.mxu0 %vm88_vm1, %v1205_v37  ;;  %1104 = vmatmul.msk.bf16.gmra.mxu1 %vm88_vm1, %v1205_v37 }
  0x20   :  { %770 = vmatpush.bf16.msra.mxu0 %v1405_v10  ;;  %783 = vmatpush.bf16.msra.mxu1 %v1446_v27 }
  0x21   :  { %343 = vmatpush.bf16.msrb.mxu2 %v1472_v35  ;;  %355 = vmatpush.bf16.msrb.mxu3 %v1476_v36 }
  0x24   :  { %771 = vmatpush.bf16.msra.mxu0 %v1429_v21  ;;  %784 = vmatpush.bf16.msra.mxu1 %v1462_v32 }
  0x25   :  { %426 = vmatpush.bf16.msra.mxu2 %v1405_v10  ;;  %356 = vmatpush.bf16.msrb.mxu3 %v1499_v40 }
  0x28   :  { %772 = vmatpush.bf16.msra.mxu0 %v1444_v26  ;;  %785 = vmatpush.bf16.msra.mxu1 %v1476_v36 }
  0x29   :  { %427 = vmatpush.bf16.msra.mxu2 %v1429_v21  ;;  %439 = vmatpush.bf16.msra.mxu3 %v1446_v27 }
  0x2c   :  { %773 = vmatpush.bf16.msra.mxu0 %v1472_v35  ;;  %786 = vmatpush.bf16.msra.mxu1 %v1499_v40 }
  0x2d   :  { %428 = vmatpush.bf16.msra.mxu2 %v1444_v26  ;;  %440 = vmatpush.bf16.msra.mxu3 %v1462_v32 }
  0x2f   :  { %1101 = vmatmul.msk.bf16.gmra.mxu0 %vm88_vm1, %v1206_v41  ;;  %1105 = vmatmul.msk.bf16.gmra.mxu1 %vm88_vm1, %v1206_v41 }
  0x31   :  { %429 = vmatpush.bf16.msra.mxu2 %v1472_v35  ;;  %441 = vmatpush.bf16.msra.mxu3 %v1476_v36 }
  0x35   :  { %442 = vmatpush.bf16.msra.mxu3 %v1499_v40 }
  0x3f   :  { %1102 = vmatmul.msk.bf16.gmra.mxu0 %vm88_vm1, %v1207_v42  ;;  %1106 = vmatmul.msk.bf16.gmra.mxu1 %vm88_vm1, %v1207_v42 }
  0x8c   :  { %v119_v43 = vpop.f32.mrf.mxu0  ;;  %v148_v44 = vpop.f32.mrf.mxu1 }
  0x8d   :  { %v1617_v41 = vadd.f32 %v119_v43, %v49_v47  ;;  %v1619_v42 = vadd.f32 %v148_v44, %v50_v46 }
  0x94   :  { %v121_v48 = vpop.f32.mrf.mxu0  ;;  %v150_v49 = vpop.f32.mrf.mxu1 }
  0x95   :  { %v1537_v50 = vadd.f32 %v121_v48, %v49_v47  ;;  %v1539_v51 = vadd.f32 %v150_v49, %v50_v46 }
  0x99   :  { %v260_v57 = vpop.f32.mrf.mxu2 }
  0x9c   :  { %v124_v52 = vpop.f32.mrf.mxu0  ;;  %v153_v53 = vpop.f32.mrf.mxu1 }
  0x9d   :  { %v1541_v54 = vadd.f32 %v124_v52, %v49_v47  ;;  %v1543_v55 = vadd.f32 %v153_v53, %v50_v46  ;;  %v273_v1 = vpop.f32.mrf.mxu3 }
  0xa1   :  { %v262_v0 = vpop.f32.mrf.mxu2 }
  0xa4   :  { %v126_v59 = vpop.f32.mrf.mxu0  ;;  %v155_v60 = vpop.f32.mrf.mxu1 }
  0xa5   :  { %v1545_v62 = vadd.f32 %v126_v59, %v49_v47  ;;  %v1547_v63 = vadd.f32 %v155_v60, %v50_v46  ;;  %v275_v11 = vpop.f32.mrf.mxu3 }
  0xac   :  { %v129_v4 = vpop.f32.mrf.mxu0  ;;  %v158_v5 = vpop.f32.mrf.mxu1 }
  0xad   :  { %v1557_v8 = vadd.f32 %v129_v4, %v49_v47  ;;  %v1559_v9 = vadd.f32 %v158_v5, %v50_v46 }
  0xaf   :  { %v499_v12 = vsel %vm1549_vm2, %v1545_v62, %v1557_v8  ;;  %v500_v13 = vsel %vm1553_vm3, %v1547_v63, %v1559_v9  ;;  %v585_v14 = vsel %vm1549_vm2, %v1557_v8, %v1545_v62  ;;  %v586_v15 = vsel %vm1553_vm3, %v1559_v9, %v1547_v63 }
  0xb4   :  { %v131_v16 = vpop.f32.mrf.mxu0  ;;  %v160_v17 = vpop.f32.mrf.mxu1 }
  0xb5   :  { %v1577_v18 = vadd.f32 %v131_v16, %v49_v47  ;;  %v1579_v19 = vadd.f32 %v160_v17, %v50_v46 }
  0xb7   :  { %v413_v20 = vsel %vm1549_vm2, %v1541_v54, %v1577_v18  ;;  %v414_v22 = vsel %vm1553_vm3, %v1543_v55, %v1579_v19  ;;  %v671_v23 = vsel %vm1549_vm2, %v1577_v18, %v1541_v54  ;;  %v672_v24 = vsel %vm1553_vm3, %v1579_v19, %v1543_v55 }
  0xbc   :  { %v134_v25 = vpop.f32.mrf.mxu0  ;;  %v163_v28 = vpop.f32.mrf.mxu1 }
  0xbd   :  { %v1597_v29 = vadd.f32 %v134_v25, %v49_v47  ;;  %v1599_v30 = vadd.f32 %v163_v28, %v50_v46 }
  0xbf   :  { %v327_v31 = vsel %vm1549_vm2, %v1537_v50, %v1597_v29  ;;  %v328_v33 = vsel %vm1553_vm3, %v1539_v51, %v1599_v30  ;;  %v757_v34 = vsel %vm1549_vm2, %v1597_v29, %v1537_v50  ;;  %v758_v37 = vsel %vm1553_vm3, %v1599_v30, %v1539_v51 }
  0xc4   :  { %v136_v38 = vpop.f32.mrf.mxu0  ;;  %v165_v39 = vpop.f32.mrf.mxu1 }
  0xc5   :  { %v1621_v45 = vadd.f32 %v136_v38, %v49_v47  ;;  %v1623_v48 = vadd.f32 %v165_v39, %v50_v46 }
  0xc7   :  { %v205_v49 = vsel %vm1549_vm2, %v1617_v41, %v1621_v45  ;;  %v843_v52 = vsel %vm1549_vm2, %v1621_v45, %v1617_v41  ;;  %v844_v43 = vsel %vm1553_vm3, %v1623_v48, %v1619_v42  ;;  %v206_v56 = vsel %vm1553_vm3, %v1619_v42, %v1623_v48 }
  0xc8   :  { %v277_v44 = vadd.f32 %v260_v57, %v205_v49  ;;  %v278_v59 = vadd.f32 %v273_v1, %v206_v56 }
  0xca   :  { %v1139_v47 = vmul.f32 -1.442695, %v277_v44  ;;  %v1140_v1 = vmul.f32 -1.442695, %v278_v59 }
  0xcc   :  { %1233 = vpow2.f32 %v1139_v47 }
  0xd2   :  { %v1234_v46 = vpop.eup %1233 }
  0xd3   :  { %v285_v53 = vadd.f32 1.0, %v1234_v46 }
  0xd5   :  { %1235 = vrcp.f32 %v285_v53  ;;  %v298_v0 = vand.u32 2147483648, %v285_v53  ;;  %v296_v3 = vand.u32 2147483647, %v285_v53  ;;  %vm292_vm5 = vweird.f32 %v285_v53 }
  0xd6   :  { %1237 = vtanh.f32 %v278_v59 }
  0xd7   :  { %v299_v4 = vor.u32 1.1754944e-38, %v298_v0  ;;  %vm297_vm7 = vcmp.eq.f32.partialorder %v296_v3, 8.507059e+37  ;;  %1239 = vpow2.f32 %v1140_v1 }
  0xdb   :  { %v1236_v58 = vpop.eup %1235 }
  0xdc   :  { %v288_v60 = vmul.f32 %v1236_v58, %v285_v53  ;;  %vm293_vm4 = vweird.f32 %v1236_v58  ;;  %v1238_v11 = vpop.eup %1237 }
  0xdd   :  { %vm294_vm6 = vmor %vm292_vm5, %vm293_vm4  ;;  %v1240_v25 = vpop.eup %1239 }
  0xde   :  { %v289_v61 = vsub.f32 1.0, %v288_v60  ;;  %v286_v28 = vadd.f32 1.0, %v1240_v25 }
  0xe0   :  { %v290_v2 = vmul.f32 %v1236_v58, %v289_v61  ;;  %1241 = vrcp.f32 %v286_v28  ;;  %vm307_vm9 = vweird.f32 %v286_v28  ;;  %v311_v60 = vand.u32 2147483647, %v286_v28 }
  0xe2   :  { %v291_v57 = vadd.f32 %v1236_v58, %v290_v2  ;;  %vm312_vm11 = vcmp.eq.f32.partialorder %v311_v60, 8.507059e+37 }
  0xe4   :  { %v295_v5 = vsel %vm294_vm6, %v1236_v58, %v291_v57  ;;  %v313_v58 = vand.u32 2147483648, %v286_v28 }
  0xe5   :  { %v300_v16 = vsel %vm297_vm7, %v299_v4, %v295_v5 }
  0xe6   :  { %v319_v17 = vmul.f32 %v1238_v11, %v300_v16  ;;  %v1242_v38 = vpop.eup %1241  ;;  %v318_v47 = vmul.f32 0.0, %v300_v16  ;;  %v314_v61 = vor.u32 1.1754944e-38, %v313_v58 }
  0xe7   :  { %v303_v39 = vmul.f32 %v1242_v38, %v286_v28  ;;  %vm308_vm8 = vweird.f32 %v1242_v38 }
  0xe8   :  { %321 = vrot.lane.b32.xlu0 %v319_v17, %s1334_s0  ;;  %vm309_vm10 = vmor %vm307_vm9, %vm308_vm8 }
  0xe9   :  { %v304_v49 = vsub.f32 1.0, %v303_v39 }
  0xeb   :  { %v305_v44 = vmul.f32 %v1242_v38, %v304_v49 }
  0xed   :  { %v306_v56 = vadd.f32 %v1242_v38, %v305_v44 }
  0xef   :  { %v310_v59 = vsel %vm309_vm10, %v1242_v38, %v306_v56 }
  0xf0   :  { %v315_v2 = vsel %vm312_vm11, %v314_v61, %v310_v59 }
 0x15a   :  { %v322_v46 = vpop.permute.xlu0 %321 }
 0x15b   :  { %v1642_v53 = vadd.f32 %v322_v46, %v318_v47 }
 0x15d   :  { %1243 = vtanh.f32 %v1642_v53 }
 0x163   :  { %v1244_v0 = vpop.eup %1243 }
 0x164   :  { %v1645_v3 = vmul.f32 %v1244_v0, %v315_v2 }
 0x166   :  { %v329_v57 = vpack.c.bf16 %v1645_v3, %v1645_v3 }
 0x168   :  { %331 = vrot.lane.b32.xlu0 %v329_v57, %s1334_s0 }
 0x1da   :  { %v332_v4 = vpop.permute.xlu0 %331 }
 0x1db   :  { %1141 = vmatmul.msk.bf16.vlgmr.msrb.gmra.mxu2 %vm247_vm12, %v332_v4  ;;  %1142 = vmatmul.msk.bf16.vlgmr.msrb.gmra.mxu3 %vm247_vm12, %v332_v4 }
 0x1dc   :  { %512 = vmatpush.bf16.msrb.mxu2 %v1405_v10  ;;  %525 = vmatpush.bf16.msrb.mxu3 %v1446_v27 }
 0x1e0   :  { %513 = vmatpush.bf16.msrb.mxu2 %v1429_v21  ;;  %526 = vmatpush.bf16.msrb.mxu3 %v1462_v32 }
 0x1e4   :  { %514 = vmatpush.bf16.msrb.mxu2 %v1444_v26  ;;  %527 = vmatpush.bf16.msrb.mxu3 %v1476_v36 }
 0x1e8   :  { %515 = vmatpush.bf16.msrb.mxu2 %v1472_v35  ;;  %528 = vmatpush.bf16.msrb.mxu3 %v1499_v40 }
 0x25e   :  { %v345_v5 = vpop.f32.mrf.mxu2  ;;  %v358_v11 = vpop.f32.mrf.mxu3 }
 0x25f   :  { %v362_v16 = vadd.f32 %v345_v5, %v327_v31  ;;  %v363_v49 = vadd.f32 %v358_v11, %v328_v33 }
 0x261   :  { %v1143_v17 = vmul.f32 -1.442695, %v362_v16  ;;  %v1144_v57 = vmul.f32 -1.442695, %v363_v49 }
 0x263   :  { %1245 = vpow2.f32 %v1143_v17 }
 0x266   :  { %v347_v1 = vpop.f32.mrf.mxu2  ;;  %v360_v25 = vpop.f32.mrf.mxu3 }
 0x269   :  { %v1246_v28 = vpop.eup %1245 }
 0x26a   :  { %v370_v38 = vadd.f32 1.0, %v1246_v28 }
 0x26c   :  { %1247 = vrcp.f32 %v370_v38  ;;  %v383_v46 = vand.u32 2147483648, %v370_v38  ;;  %v381_v31 = vand.u32 2147483647, %v370_v38  ;;  %vm377_vm14 = vweird.f32 %v370_v38 }
 0x26d   :  { %1249 = vtanh.f32 %v363_v49 }
 0x26e   :  { %v384_v60 = vor.u32 1.1754944e-38, %v383_v46  ;;  %vm382_vm0 = vcmp.eq.f32.partialorder %v381_v31, 8.507059e+37  ;;  %1251 = vpow2.f32 %v1144_v57 }
 0x272   :  { %v1248_v39 = vpop.eup %1247 }
 0x273   :  { %v373_v44 = vmul.f32 %v1248_v39, %v370_v38  ;;  %vm378_vm13 = vweird.f32 %v1248_v39  ;;  %v1250_v61 = vpop.eup %1249 }
 0x274   :  { %vm379_vm15 = vmor %vm377_vm14, %vm378_vm13  ;;  %v1252_v33 = vpop.eup %1251 }
 0x275   :  { %v374_v47 = vsub.f32 1.0, %v373_v44  ;;  %v371_v4 = vadd.f32 1.0, %v1252_v33 }
 0x277   :  { %v375_v56 = vmul.f32 %v1248_v39, %v374_v47  ;;  %1253 = vrcp.f32 %v371_v4  ;;  %vm392_vm4 = vweird.f32 %v371_v4  ;;  %v396_v49 = vand.u32 2147483647, %v371_v4 }
 0x279   :  { %v376_v58 = vadd.f32 %v1248_v39, %v375_v56  ;;  %vm397_vm6 = vcmp.eq.f32.partialorder %v396_v49, 8.507059e+37 }
 0x27b   :  { %v380_v59 = vsel %vm379_vm15, %v1248_v39, %v376_v58  ;;  %v398_v39 = vand.u32 2147483648, %v371_v4 }
 0x27c   :  { %v385_v0 = vsel %vm382_vm0, %v384_v60, %v380_v59 }
 0x27d   :  { %v404_v2 = vmul.f32 %v1250_v61, %v385_v0  ;;  %v1254_v5 = vpop.eup %1253  ;;  %v403_v1 = vmul.f32 %v385_v0, %v1642_v53  ;;  %v399_v47 = vor.u32 1.1754944e-38, %v398_v39 }
 0x27e   :  { %v388_v11 = vmul.f32 %v1254_v5, %v371_v4  ;;  %vm393_vm1 = vweird.f32 %v1254_v5 }
 0x27f   :  { %406 = vrot.lane.b32.xlu1 %v404_v2, %s1334_s0  ;;  %vm394_vm5 = vmor %vm392_vm4, %vm393_vm1 }
 0x280   :  { %v389_v16 = vsub.f32 1.0, %v388_v11 }
 0x282   :  { %v390_v17 = vmul.f32 %v1254_v5, %v389_v16 }
 0x284   :  { %v391_v38 = vadd.f32 %v1254_v5, %v390_v17 }
 0x286   :  { %v395_v44 = vsel %vm394_vm5, %v1254_v5, %v391_v38 }
 0x287   :  { %v400_v56 = vsel %vm397_vm6, %v399_v47, %v395_v44 }
 0x2f1   :  { %v407_v25 = vpop.permute.xlu1 %406 }
 0x2f2   :  { %v1672_v28 = vadd.f32 %v407_v25, %v403_v1 }
 0x2f4   :  { %1255 = vtanh.f32 %v1672_v28 }
 0x2fa   :  { %v1256_v46 = vpop.eup %1255 }
 0x2fb   :  { %v1675_v31 = vmul.f32 %v1256_v46, %v400_v56 }
 0x2fd   :  { %v415_v53 = vpack.c.bf16 %v1675_v31, %v1675_v31 }
 0x2ff   :  { %417 = vrot.lane.b32.xlu1 %v415_v53, %s1334_s0 }
 0x371   :  { %v418_v58 = vpop.permute.xlu1 %417 }
 0x372   :  { %1145 = vmatmul.msk.bf16.vlgmr.msra.gmra.mxu2 %vm247_vm12, %v418_v58  ;;  %1146 = vmatmul.msk.bf16.vlgmr.msra.gmra.mxu3 %vm247_vm12, %v418_v58 }
 0x373   :  { %684 = vmatpush.bf16.msra.mxu2 %v1405_v10  ;;  %697 = vmatpush.bf16.msra.mxu3 %v1446_v27 }
 0x377   :  { %685 = vmatpush.bf16.msra.mxu2 %v1429_v21  ;;  %698 = vmatpush.bf16.msra.mxu3 %v1462_v32 }
 0x37b   :  { %686 = vmatpush.bf16.msra.mxu2 %v1444_v26  ;;  %699 = vmatpush.bf16.msra.mxu3 %v1476_v36 }
 0x37f   :  { %687 = vmatpush.bf16.msra.mxu2 %v1472_v35  ;;  %700 = vmatpush.bf16.msra.mxu3 %v1499_v40 }
 0x3f5   :  { %v431_v60 = vpop.f32.mrf.mxu2  ;;  %v444_v59 = vpop.f32.mrf.mxu3 }
 0x3f6   :  { %v448_v61 = vadd.f32 %v431_v60, %v413_v20  ;;  %v449_v11 = vadd.f32 %v444_v59, %v414_v22 }
 0x3f8   :  { %v1147_v0 = vmul.f32 -1.442695, %v448_v61  ;;  %v1148_v56 = vmul.f32 -1.442695, %v449_v11 }
 0x3fa   :  { %1257 = vpow2.f32 %v1147_v0 }
 0x3fd   :  { %v433_v2 = vpop.f32.mrf.mxu2  ;;  %v446_v57 = vpop.f32.mrf.mxu3 }
 0x400   :  { %v1258_v33 = vpop.eup %1257 }
 0x401   :  { %v456_v4 = vadd.f32 1.0, %v1258_v33 }
 0x403   :  { %1259 = vrcp.f32 %v456_v4  ;;  %v469_v1 = vand.u32 2147483648, %v456_v4  ;;  %v467_v20 = vand.u32 2147483647, %v456_v4  ;;  %vm463_vm8 = vweird.f32 %v456_v4 }
 0x404   :  { %1261 = vtanh.f32 %v449_v11 }
 0x405   :  { %v470_v39 = vor.u32 1.1754944e-38, %v469_v1  ;;  %vm468_vm10 = vcmp.eq.f32.partialorder %v467_v20, 8.507059e+37  ;;  %1263 = vpow2.f32 %v1148_v56 }
 0x409   :  { %v1260_v5 = vpop.eup %1259 }
 0x40a   :  { %v459_v16 = vmul.f32 %v1260_v5, %v456_v4  ;;  %vm464_vm7 = vweird.f32 %v1260_v5  ;;  %v1262_v44 = vpop.eup %1261 }
 0x40b   :  { %vm465_vm9 = vmor %vm463_vm8, %vm464_vm7  ;;  %v1264_v22 = vpop.eup %1263 }
 0x40c   :  { %v460_v17 = vsub.f32 1.0, %v459_v16  ;;  %v457_v53 = vadd.f32 1.0, %v1264_v22 }
 0x40e   :  { %v461_v25 = vmul.f32 %v1260_v5, %v460_v17  ;;  %1265 = vrcp.f32 %v457_v53  ;;  %v484_v4 = vand.u32 2147483648, %v457_v53  ;;  %vm478_vm13 = vweird.f32 %v457_v53 }
 0x410   :  { %v462_v38 = vadd.f32 %v1260_v5, %v461_v25  ;;  %v485_v16 = vor.u32 1.1754944e-38, %v484_v4  ;;  %v412_v25 = vmax.f32 %v1645_v3, %v1675_v31 }
 0x412   :  { %v466_v49 = vsel %vm465_vm9, %v1260_v5, %v462_v38  ;;  %v482_v5 = vand.u32 2147483647, %v457_v53 }
 0x413   :  { %v471_v47 = vsel %vm468_vm10, %v470_v39, %v466_v49 }
 0x414   :  { %v490_v46 = vmul.f32 %v1262_v44, %v471_v47  ;;  %v1266_v58 = vpop.eup %1265  ;;  %v489_v0 = vmul.f32 %v471_v47, %v1672_v28  ;;  %vm483_vm15 = vcmp.eq.f32.partialorder %v482_v5, 8.507059e+37 }
 0x415   :  { %v474_v60 = vmul.f32 %v1266_v58, %v457_v53  ;;  %vm479_vm11 = vweird.f32 %v1266_v58 }
 0x416   :  { %492 = vrot.lane.b32.xlu2 %v490_v46, %s1334_s0  ;;  %vm480_vm14 = vmor %vm478_vm13, %vm479_vm11 }
 0x417   :  { %v475_v59 = vsub.f32 1.0, %v474_v60 }
 0x419   :  { %v476_v61 = vmul.f32 %v1266_v58, %v475_v59 }
 0x41b   :  { %v477_v33 = vadd.f32 %v1266_v58, %v476_v61 }
 0x41d   :  { %v481_v11 = vsel %vm480_vm14, %v1266_v58, %v477_v33 }
 0x41e   :  { %v486_v1 = vsel %vm483_vm15, %v485_v16, %v481_v11 }
 0x470   :  { %v493_v2 = vpop.permute.xlu2 %492 }
 0x471   :  { %v1702_v57 = vadd.f32 %v493_v2, %v489_v0 }
 0x473   :  { %1267 = vtanh.f32 %v1702_v57 }
 0x479   :  { %v1268_v17 = vpop.eup %1267 }
 0x47a   :  { %v497_v28 = vmul.f32 %v1268_v17, %v486_v1 }
 0x47c   :  { %v501_v20 = vpack.c.bf16 %v497_v28, %v497_v28  ;;  %v1707_v38 = vmax.f32 %v412_v25, %v497_v28 }
 0x47e   :  { %503 = vrot.lane.b32.xlu2 %v501_v20, %s1334_s0 }
 0x4d8   :  { %v504_v39 = vpop.permute.xlu2 %503 }
 0x4d9   :  { %1149 = vmatmul.msk.bf16.vlgmr.msrb.gmra.mxu2 %vm247_vm12, %v504_v39  ;;  %1150 = vmatmul.msk.bf16.vlgmr.msrb.gmra.mxu3 %vm247_vm12, %v504_v39 }
 0x4da   :  { %856 = vmatpush.bf16.msrb.mxu2 %v1405_v10  ;;  %869 = vmatpush.bf16.msrb.mxu3 %v1446_v27 }
 0x4de   :  { %857 = vmatpush.bf16.msrb.mxu2 %v1429_v21  ;;  %870 = vmatpush.bf16.msrb.mxu3 %v1462_v32 }
 0x4e2   :  { %858 = vmatpush.bf16.msrb.mxu2 %v1444_v26  ;;  %871 = vmatpush.bf16.msrb.mxu3 %v1476_v36 }
 0x4e6   :  { %859 = vmatpush.bf16.msrb.mxu2 %v1472_v35  ;;  %872 = vmatpush.bf16.msrb.mxu3 %v1499_v40 }
 0x55c   :  { %v517_v3 = vpop.f32.mrf.mxu2  ;;  %v530_v31 = vpop.f32.mrf.mxu3 }
 0x55d   :  { %v534_v10 = vadd.f32 %v517_v3, %v499_v12  ;;  %v535_v35 = vadd.f32 %v530_v31, %v500_v13 }
 0x55f   :  { %v1151_v27 = vmul.f32 -1.442695, %v534_v10  ;;  %v1152_v61 = vmul.f32 -1.442695, %v535_v35 }
 0x561   :  { %1269 = vpow2.f32 %v1151_v27 }
 0x564   :  { %v519_v21 = vpop.f32.mrf.mxu2  ;;  %v532_v32 = vpop.f32.mrf.mxu3 }
 0x567   :  { %v1270_v49 = vpop.eup %1269 }
 0x568   :  { %v542_v26 = vadd.f32 1.0, %v1270_v49 }
 0x56a   :  { %1271 = vrcp.f32 %v542_v26  ;;  %v555_v47 = vand.u32 2147483648, %v542_v26  ;;  %v553_v12 = vand.u32 2147483647, %v542_v26  ;;  %vm549_vm1 = vweird.f32 %v542_v26 }
 0x56b   :  { %1273 = vtanh.f32 %v535_v35 }
 0x56c   :  { %v556_v22 = vor.u32 1.1754944e-38, %v555_v47  ;;  %vm554_vm5 = vcmp.eq.f32.partialorder %v553_v12, 8.507059e+37  ;;  %1275 = vpow2.f32 %v1152_v61 }
 0x570   :  { %v1272_v36 = vpop.eup %1271 }
 0x571   :  { %v545_v40 = vmul.f32 %v1272_v36, %v542_v26  ;;  %vm550_vm0 = vweird.f32 %v1272_v36  ;;  %v1274_v58 = vpop.eup %1273 }
 0x572   :  { %vm551_vm4 = vmor %vm549_vm1, %vm550_vm0  ;;  %v1276_v13 = vpop.eup %1275 }
 0x573   :  { %v546_v44 = vsub.f32 1.0, %v545_v40  ;;  %v543_v0 = vadd.f32 1.0, %v1276_v13 }
 0x575   :  { %v547_v46 = vmul.f32 %v1272_v36, %v546_v44  ;;  %1277 = vrcp.f32 %v543_v0  ;;  %v570_v25 = vand.u32 2147483648, %v543_v0  ;;  %vm564_vm7 = vweird.f32 %v543_v0 }
 0x576   :  { %v568_v28 = vand.u32 2147483647, %v543_v0 }
 0x577   :  { %v548_v56 = vadd.f32 %v1272_v36, %v547_v46  ;;  %v571_v39 = vor.u32 1.1754944e-38, %v570_v25 }
 0x578   :  { %vm569_vm9 = vcmp.eq.f32.partialorder %v568_v28, 8.507059e+37 }
 0x579   :  { %v552_v53 = vsel %vm551_vm4, %v1272_v36, %v548_v56 }
 0x57a   :  { %v557_v60 = vsel %vm554_vm5, %v556_v22, %v552_v53 }
 0x57b   :  { %v576_v59 = vmul.f32 %v1274_v58, %v557_v60  ;;  %v1278_v2 = vpop.eup %1277  ;;  %v575_v11 = vmul.f32 %v557_v60, %v1702_v57 }
 0x57c   :  { %v560_v33 = vmul.f32 %v1278_v2, %v543_v0  ;;  %vm565_vm6 = vweird.f32 %v1278_v2 }
 0x57d   :  { %578 = vrot.lane.b32.xlu0 %v576_v59, %s1334_s0  ;;  %vm566_vm8 = vmor %vm564_vm7, %vm565_vm6 }
 0x57e   :  { %v561_v4 = vsub.f32 1.0, %v560_v33 }
 0x580   :  { %v562_v5 = vmul.f32 %v1278_v2, %v561_v4 }
 0x582   :  { %v563_v1 = vadd.f32 %v1278_v2, %v562_v5 }
 0x584   :  { %v567_v20 = vsel %vm566_vm8, %v1278_v2, %v563_v1 }
 0x585   :  { %v572_v31 = vsel %vm569_vm9, %v571_v39, %v567_v20 }
 0x5ef   :  { %v579_v16 = vpop.permute.xlu0 %578 }
 0x5f0   :  { %v581_v17 = vadd.f32 %v579_v16, %v575_v11 }
 0x5f2   :  { %1279 = vtanh.f32 %v581_v17 }
 0x5f8   :  { %v1280_v3 = vpop.eup %1279 }
 0x5f9   :  { %v1732_v10 = vmul.f32 %v1280_v3, %v572_v31 }
 0x5fb   :  { %v587_v27 = vpack.c.bf16 %v1732_v10, %v1732_v10  ;;  %v584_v57 = vmax.f32 %v1707_v38, %v1732_v10 }
 0x5fd   :  { %589 = vrot.lane.b32.xlu1 %v587_v27, %s1334_s0 }
 0x66f   :  { %v590_v21 = vpop.permute.xlu1 %589 }
 0x670   :  { %1153 = vmatmul.msk.bf16.vlgmr.msrb.gmra.mxu0 %vm247_vm12, %v590_v21  ;;  %1154 = vmatmul.msk.bf16.vlgmr.msrb.gmra.mxu1 %vm247_vm12, %v590_v21 }
 0x6ed   :  { %v603_v32 = vpop.f32.mrf.mxu0  ;;  %v616_v49 = vpop.f32.mrf.mxu1 }
 0x6ee   :  { %v620_v26 = vadd.f32 %v603_v32, %v585_v14  ;;  %v621_v46 = vadd.f32 %v616_v49, %v586_v15 }
 0x6f0   :  { %v1155_v36 = vmul.f32 -1.442695, %v620_v26  ;;  %v1156_v63 = vmul.f32 -1.442695, %v621_v46 }
 0x6f2   :  { %1281 = vpow2.f32 %v1155_v36 }
 0x6f5   :  { %v605_v35 = vpop.f32.mrf.mxu0  ;;  %v618_v40 = vpop.f32.mrf.mxu1 }
 0x6f8   :  { %v1282_v38 = vpop.eup %1281 }
 0x6f9   :  { %v628_v44 = vadd.f32 1.0, %v1282_v38 }
 0x6fb   :  { %1283 = vrcp.f32 %v628_v44  ;;  %v641_v22 = vand.u32 2147483648, %v628_v44  ;;  %v639_v8 = vand.u32 2147483647, %v628_v44  ;;  %vm635_vm11 = vweird.f32 %v628_v44 }
 0x6fc   :  { %1285 = vtanh.f32 %v621_v46 }
 0x6fd   :  { %v642_v53 = vor.u32 1.1754944e-38, %v641_v22  ;;  %vm640_vm14 = vcmp.eq.f32.partialorder %v639_v8, 8.507059e+37  ;;  %1287 = vpow2.f32 %v1156_v63 }
 0x701   :  { %v1284_v47 = vpop.eup %1283 }
 0x702   :  { %v631_v12 = vmul.f32 %v1284_v47, %v628_v44  ;;  %vm636_vm10 = vweird.f32 %v1284_v47  ;;  %v1286_v60 = vpop.eup %1285 }
 0x703   :  { %vm637_vm13 = vmor %vm635_vm11, %vm636_vm10  ;;  %v1288_v9 = vpop.eup %1287 }
 0x704   :  { %v632_v56 = vsub.f32 1.0, %v631_v12  ;;  %v629_v15 = vadd.f32 1.0, %v1288_v9 }
 0x706   :  { %v633_v62 = vmul.f32 %v1284_v47, %v632_v56  ;;  %1289 = vrcp.f32 %v629_v15  ;;  %v656_v1 = vand.u32 2147483648, %v629_v15  ;;  %vm650_vm0 = vweird.f32 %v629_v15 }
 0x707   :  { %v654_v25 = vand.u32 2147483647, %v629_v15 }
 0x708   :  { %v634_v14 = vadd.f32 %v1284_v47, %v633_v62  ;;  %v657_v20 = vor.u32 1.1754944e-38, %v656_v1 }
 0x709   :  { %vm655_vm4 = vcmp.eq.f32.partialorder %v654_v25, 8.507059e+37 }
 0x70a   :  { %v638_v58 = vsel %vm637_vm13, %v1284_v47, %v634_v14 }
 0x70b   :  { %v643_v59 = vsel %vm640_vm14, %v642_v53, %v638_v58 }
 0x70c   :  { %v662_v61 = vmul.f32 %v1286_v60, %v643_v59  ;;  %v1290_v13 = vpop.eup %1289  ;;  %v661_v4 = vmul.f32 %v643_v59, %v581_v17 }
 0x70d   :  { %v646_v0 = vmul.f32 %v1290_v13, %v629_v15  ;;  %vm651_vm15 = vweird.f32 %v1290_v13 }
 0x70e   :  { %664 = vrot.lane.b32.xlu2 %v662_v61, %s1334_s0  ;;  %vm652_vm1 = vmor %vm650_vm0, %vm651_vm15 }
 0x70f   :  { %v647_v2 = vsub.f32 1.0, %v646_v0 }
 0x711   :  { %v648_v33 = vmul.f32 %v1290_v13, %v647_v2 }
 0x713   :  { %v649_v16 = vadd.f32 %v1290_v13, %v648_v33 }
 0x715   :  { %v653_v28 = vsel %vm652_vm1, %v1290_v13, %v649_v16 }
 0x716   :  { %v658_v3 = vsel %vm655_vm4, %v657_v20, %v653_v28 }
 0x768   :  { %v665_v5 = vpop.permute.xlu2 %664 }
 0x769   :  { %v667_v11 = vadd.f32 %v665_v5, %v661_v4 }
 0x76b   :  { %1291 = vtanh.f32 %v667_v11 }
 0x771   :  { %v1292_v39 = vpop.eup %1291 }
 0x772   :  { %v669_v31 = vmul.f32 %v1292_v39, %v658_v3 }
 0x774   :  { %v673_v10 = vpack.c.bf16 %v669_v31, %v669_v31  ;;  %v1752_v27 = vmax.f32 %v584_v57, %v669_v31 }
 0x776   :  { %675 = vrot.lane.b32.xlu0 %v673_v10, %s1334_s0 }
 0x7e8   :  { %v676_v17 = vpop.permute.xlu0 %675 }
 0x7e9   :  { %1157 = vmatmul.msk.bf16.vlgmr.msra.gmra.mxu2 %vm247_vm12, %v676_v17  ;;  %1158 = vmatmul.msk.bf16.vlgmr.msra.gmra.mxu3 %vm247_vm12, %v676_v17 }
 0x86c   :  { %v689_v21 = vpop.f32.mrf.mxu2  ;;  %v702_v32 = vpop.f32.mrf.mxu3 }
 0x86d   :  { %v706_v49 = vadd.f32 %v689_v21, %v671_v23  ;;  %v707_v44 = vadd.f32 %v702_v32, %v672_v24 }
 0x86f   :  { %v1159_v26 = vmul.f32 -1.442695, %v706_v49  ;;  %v1160_v55 = vmul.f32 -1.442695, %v707_v44 }
 0x871   :  { %1293 = vpow2.f32 %v1159_v26 }
 0x874   :  { %v691_v36 = vpop.f32.mrf.mxu2  ;;  %v704_v57 = vpop.f32.mrf.mxu3 }
 0x877   :  { %v1294_v35 = vpop.eup %1293 }
 0x878   :  { %v714_v40 = vadd.f32 1.0, %v1294_v35 }
 0x87a   :  { %1295 = vrcp.f32 %v714_v40  ;;  %v727_v12 = vand.u32 2147483648, %v714_v40  ;;  %v725_v18 = vand.u32 2147483647, %v714_v40  ;;  %vm721_vm6 = vweird.f32 %v714_v40 }
 0x87b   :  { %1297 = vtanh.f32 %v707_v44 }
 0x87c   :  { %v728_v56 = vor.u32 1.1754944e-38, %v727_v12  ;;  %vm726_vm8 = vcmp.eq.f32.partialorder %v725_v18, 8.507059e+37  ;;  %1299 = vpow2.f32 %v1160_v55 }
 0x880   :  { %v1296_v38 = vpop.eup %1295 }
 0x881   :  { %v717_v47 = vmul.f32 %v1296_v38, %v714_v40  ;;  %vm722_vm5 = vweird.f32 %v1296_v38  ;;  %v1298_v62 = vpop.eup %1297 }
 0x882   :  { %vm723_vm7 = vmor %vm721_vm6, %vm722_vm5  ;;  %v1300_v19 = vpop.eup %1299 }
 0x883   :  { %v718_v46 = vsub.f32 1.0, %v717_v47  ;;  %v715_v24 = vadd.f32 1.0, %v1300_v19 }
 0x885   :  { %v719_v54 = vmul.f32 %v1296_v38, %v718_v46  ;;  %1301 = vrcp.f32 %v715_v24  ;;  %v742_v13 = vand.u32 2147483648, %v715_v24  ;;  %vm736_vm10 = vweird.f32 %v715_v24 }
 0x886   :  { %v740_v0 = vand.u32 2147483647, %v715_v24 }
 0x887   :  { %v720_v23 = vadd.f32 %v1296_v38, %v719_v54  ;;  %v743_v33 = vor.u32 1.1754944e-38, %v742_v13 }
 0x888   :  { %vm741_vm13 = vcmp.eq.f32.partialorder %v740_v0, 8.507059e+37 }
 0x889   :  { %v724_v22 = vsel %vm723_vm7, %v1296_v38, %v720_v23 }
 0x88a   :  { %v729_v8 = vsel %vm726_vm8, %v728_v56, %v724_v22 }
 0x88b   :  { %v748_v14 = vmul.f32 %v1298_v62, %v729_v8  ;;  %v1302_v53 = vpop.eup %1301  ;;  %v747_v61 = vmul.f32 %v729_v8, %v667_v11 }
 0x88c   :  { %v732_v58 = vmul.f32 %v1302_v53, %v715_v24  ;;  %vm737_vm9 = vweird.f32 %v1302_v53 }
 0x88d   :  { %750 = vrot.lane.b32.xlu1 %v748_v14, %s1334_s0  ;;  %vm738_vm11 = vmor %vm736_vm10, %vm737_vm9 }
 0x88e   :  { %v733_v60 = vsub.f32 1.0, %v732_v58 }
 0x890   :  { %v734_v59 = vmul.f32 %v1302_v53, %v733_v60 }
 0x892   :  { %v735_v15 = vadd.f32 %v1302_v53, %v734_v59 }
 0x894   :  { %v739_v2 = vsel %vm738_vm11, %v1302_v53, %v735_v15 }
 0x895   :  { %v744_v5 = vsel %vm741_vm13, %v743_v33, %v739_v2 }
 0x8ff   :  { %v751_v63 = vpop.permute.xlu1 %750 }
 0x900   :  { %v753_v9 = vadd.f32 %v751_v63, %v747_v61 }
 0x902   :  { %1303 = vtanh.f32 %v753_v9 }
 0x908   :  { %v1304_v4 = vpop.eup %1303 }
 0x909   :  { %v1768_v16 = vmul.f32 %v1304_v4, %v744_v5 }
 0x90b   :  { %v759_v1 = vpack.c.bf16 %v1768_v16, %v1768_v16  ;;  %v756_v11 = vmax.f32 %v1752_v27, %v1768_v16 }
 0x90d   :  { %761 = vrot.lane.b32.xlu2 %v759_v1, %s1334_s0 }
 0x967   :  { %v762_v25 = vpop.permute.xlu2 %761 }
 0x968   :  { %1161 = vmatmul.msk.bf16.vlgmr.msra.gmra.mxu0 %vm247_vm12, %v762_v25  ;;  %1162 = vmatmul.msk.bf16.vlgmr.msra.gmra.mxu1 %vm247_vm12, %v762_v25 }
 0x9e5   :  { %v775_v28 = vpop.f32.mrf.mxu0  ;;  %v788_v20 = vpop.f32.mrf.mxu1 }
 0x9e6   :  { %v792_v39 = vadd.f32 %v775_v28, %v757_v34  ;;  %v793_v32 = vadd.f32 %v788_v20, %v758_v37 }
 0x9e8   :  { %v1163_v3 = vmul.f32 -1.442695, %v792_v39  ;;  %v1164_v51 = vmul.f32 -1.442695, %v793_v32  ;;  %v1221_v39 = vld [vmem:[%s1855_s5 + $0x18] sm:$0xff] }
 0x9e9   :  { %983 = vmatpush.bf16.msrb.mxu0 %v1221_v39 }
 0x9ea   :  { %1305 = vpow2.f32 %v1163_v3  ;;  %v1220_v3 = vld [vmem:[%s1855_s5 + $0x10] sm:$0xff] }
 0x9ed   :  { %v777_v31 = vpop.f32.mrf.mxu0  ;;  %v790_v10 = vpop.f32.mrf.mxu1  ;;  %984 = vmatpush.bf16.msrb.mxu0 %v1220_v3 }
 0x9f0   :  { %v1306_v27 = vpop.eup %1305 }
 0x9f1   :  { %v800_v17 = vadd.f32 1.0, %v1306_v27  ;;  %v1219_v27 = vld [vmem:[%s1855_s5 + $0x8] sm:$0xff] }
 0x9f2   :  { %985 = vmatpush.bf16.msrb.mxu0 %v1219_v27 }
 0x9f3   :  { %1307 = vrcp.f32 %v800_v17  ;;  %v813_v36 = vand.u32 2147483648, %v800_v17  ;;  %v811_v29 = vand.u32 2147483647, %v800_v17  ;;  %vm807_vm15 = vweird.f32 %v800_v17 }
 0x9f4   :  { %1309 = vtanh.f32 %v793_v32 }
 0x9f5   :  { %v814_v57 = vor.u32 1.1754944e-38, %v813_v36  ;;  %vm812_vm1 = vcmp.eq.f32.partialorder %v811_v29, 8.507059e+37  ;;  %1311 = vpow2.f32 %v1164_v51 }
 0x9f9   :  { %v1308_v21 = vpop.eup %1307 }
 0x9fa   :  { %v803_v49 = vmul.f32 %v1308_v21, %v800_v17  ;;  %vm808_vm14 = vweird.f32 %v1308_v21  ;;  %v1310_v40 = vpop.eup %1309 }
 0x9fb   :  { %vm809_vm0 = vmor %vm807_vm15, %vm808_vm14  ;;  %v1312_v30 = vpop.eup %1311 }
 0x9fc   :  { %v804_v26 = vsub.f32 1.0, %v803_v49  ;;  %v801_v37 = vadd.f32 1.0, %v1312_v30 }
 0x9fe   :  { %v805_v50 = vmul.f32 %v1308_v21, %v804_v26  ;;  %1313 = vrcp.f32 %v801_v37  ;;  %v828_v62 = vand.u32 2147483648, %v801_v37  ;;  %vm822_vm5 = vweird.f32 %v801_v37 }
 0x9ff   :  { %v826_v8 = vand.u32 2147483647, %v801_v37 }
 0xa00   :  { %v806_v34 = vadd.f32 %v1308_v21, %v805_v50  ;;  %v829_v55 = vor.u32 1.1754944e-38, %v828_v62  ;;  %v1231_v62 = vld [vmem:[%s1857_s7] ss:$0 sm:$0xff] }
 0xa01   :  { %vm827_vm7 = vcmp.eq.f32.partialorder %v826_v8, 8.507059e+37 }
 0xa02   :  { %v810_v35 = vsel %vm809_vm0, %v1308_v21, %v806_v34  ;;  %v1218_v21 = vld [vmem:[%s1855_s5] sm:$0xff] }
 0xa03   :  { %v815_v38 = vsel %vm812_vm1, %v814_v57, %v810_v35  ;;  %986 = vmatpush.bf16.msrb.mxu0 %v1218_v21 }
 0xa04   :  { %v834_v44 = vmul.f32 %v1310_v40, %v815_v38  ;;  %v1314_v47 = vpop.eup %1313  ;;  %v833_v18 = vmul.f32 %v815_v38, %v753_v9 }
 0xa05   :  { %v818_v46 = vmul.f32 %v1314_v47, %v801_v37  ;;  %vm823_vm4 = vweird.f32 %v1314_v47  ;;  %v938_v37 = vld [vmem:[%s1858_s1] sm:$0xff] }
 0xa06   :  { %836 = vrot.lane.b32.xlu0 %v834_v44, %s1334_s0  ;;  %vm824_vm6 = vmor %vm822_vm5, %vm823_vm4 }
 0xa07   :  { %v819_v12 = vsub.f32 1.0, %v818_v46  ;;  %v1224_v46 = vld [vmem:[%s1859_s8 + $0x10] sm:$0xff] }
 0xa09   :  { %v820_v54 = vmul.f32 %v1314_v47, %v819_v12 }
 0xa0b   :  { %v821_v22 = vadd.f32 %v1314_v47, %v820_v54  ;;  %v1223_v54 = vld [vmem:[%s1859_s8 + $0x8] sm:$0xff] }
 0xa0d   :  { %v825_v14 = vsel %vm824_vm6, %v1314_v47, %v821_v22  ;;  %v1225_v47 = vld [vmem:[%s1859_s8 + $0x18] sm:$0xff] }
 0xa0e   :  { %v830_v24 = vsel %vm827_vm7, %v829_v55, %v825_v14  ;;  %1042 = vmatpush.bf16.msrb.mxu1 %v1225_v47 }
 0xa12   :  { %1043 = vmatpush.bf16.msrb.mxu1 %v1224_v46 }
 0xa16   :  { %1044 = vmatpush.bf16.msrb.mxu1 %v1223_v54 }
 0xa78   :  { %v837_v23 = vpop.permute.xlu0 %836 }
 0xa79   :  { %v1788_v56 = vadd.f32 %v837_v23, %v833_v18  ;;  %v1222_v18 = vld [vmem:[%s1859_s8] sm:$0xff] }
 0xa7a   :  { %1045 = vmatpush.bf16.msrb.mxu1 %v1222_v18  ;;  %v1230_v23 = vld [vmem:[%s1856_s6] ss:$0 sm:$0xff] }
 0xa7b   :  { %1315 = vtanh.f32 %v1788_v56 }
 0xa81   :  { %v1316_v19 = vpop.eup %1315 }
 0xa82   :  { %v841_v53 = vmul.f32 %v1316_v19, %v830_v24 }
 0xa84   :  { %v845_v58 = vpack.c.bf16 %v841_v53, %v841_v53  ;;  %v1791_v60 = vmax.f32 %v756_v11, %v841_v53 }
 0xa86   :  { %847 = vrot.lane.b32.xlu1 %v845_v58, %s1334_s0  ;;  %v1232_v58 = vld [vmem:[%s1860_s9] ss:$0 sm:$0xff] }
 0xa8e   :  { %942 = vperm.xlu1 %1228, %v938_v37  }
 0xaf8   :  { %v848_v59 = vpop.permute.xlu1 %847 }
 0xaf9   :  { %1165 = vmatmul.msk.bf16.vlgmr.msrb.gmra.mxu2 %vm247_vm12, %v848_v59  ;;  %1166 = vmatmul.msk.bf16.vlgmr.msrb.gmra.mxu3 %vm247_vm12, %v848_v59 }
 0xb7c   :  { %v861_v61 = vpop.f32.mrf.mxu2  ;;  %v874_v63 = vpop.f32.mrf.mxu3 }
 0xb7d   :  { %v878_v9 = vadd.f32 %v861_v61, %v843_v52  ;;  %v879_v5 = vadd.f32 %v874_v63, %v844_v43 }
 0xb7f   :  { %v1167_v15 = vmul.f32 -1.442695, %v878_v9  ;;  %v1168_v42 = vmul.f32 -1.442695, %v879_v5 }
 0xb81   :  { %1317 = vpow2.f32 %v1167_v15 }
 0xb84   :  { %v863_v13 = vpop.f32.mrf.mxu2  ;;  %v876_v0 = vpop.f32.mrf.mxu3 }
 0xb87   :  { %v1318_v2 = vpop.eup %1317 }
 0xb88   :  { %v886_v33 = vadd.f32 1.0, %v1318_v2 }
 0xb8a   :  { %1319 = vrcp.f32 %v886_v33  ;;  %v899_v1 = vand.u32 2147483648, %v886_v33  ;;  %v897_v45 = vand.u32 2147483647, %v886_v33  ;;  %vm893_vm8 = vweird.f32 %v886_v33 }
 0xb8b   :  { %1321 = vtanh.f32 %v879_v5 }
 0xb8c   :  { %v900_v11 = vor.u32 1.1754944e-38, %v899_v1  ;;  %vm898_vm10 = vcmp.eq.f32.partialorder %v897_v45, 8.507059e+37  ;;  %1323 = vpow2.f32 %v1168_v42 }
 0xb90   :  { %v1320_v4 = vpop.eup %1319 }
 0xb91   :  { %v889_v16 = vmul.f32 %v1320_v4, %v886_v33  ;;  %vm894_vm2 = vweird.f32 %v1320_v4  ;;  %v1322_v28 = vpop.eup %1321 }
 0xb92   :  { %vm895_vm9 = vmor %vm893_vm8, %vm894_vm2  ;;  %v1324_v48 = vpop.eup %1323 }
 0xb93   :  { %v890_v6 = vsub.f32 1.0, %v889_v16  ;;  %v887_v43 = vadd.f32 1.0, %v1324_v48 }
 0xb95   :  { %v891_v41 = vmul.f32 %v1320_v4, %v890_v6  ;;  %1325 = vrcp.f32 %v887_v43  ;;  %v914_v29 = vand.u32 2147483648, %v887_v43  ;;  %vm908_vm11 = vweird.f32 %v887_v43 }
 0xb96   :  { %v912_v34 = vand.u32 2147483647, %v887_v43 }
 0xb97   :  { %v892_v52 = vadd.f32 %v1320_v4, %v891_v41  ;;  %v915_v35 = vor.u32 1.1754944e-38, %v914_v29 }
 0xb98   :  { %vm913_vm14 = vcmp.eq.f32.partialorder %v912_v34, 8.507059e+37 }
 0xb99   :  { %v896_v25 = vsel %vm895_vm9, %v1320_v4, %v892_v52 }
 0xb9a   :  { %v901_v20 = vsel %vm898_vm10, %v900_v11, %v896_v25 }
 0xb9b   :  { %v920_v7 = vmul.f32 %v1322_v28, %v901_v20  ;;  %v1326_v31 = vpop.eup %1325  ;;  %v919_v49 = vmul.f32 %v901_v20, %v1788_v56  ;;  %v943_v56 = vpop.permute.xlu1 %942 }
 0xb9c   :  { %v904_v10 = vmul.f32 %v1326_v31, %v887_v43  ;;  %vm909_vm3 = vweird.f32 %v1326_v31  ;;  %v948_v22 = vmul.f32 %v1230_v23, %v943_v56 }
 0xb9d   :  { %922 = vrot.lane.b32.xlu2 %v920_v7, %s1334_s0  ;;  %vm910_vm13 = vmor %vm908_vm11, %vm909_vm3 }
 0xb9e   :  { %v905_v17 = vsub.f32 1.0, %v904_v10 }
 0xba0   :  { %v906_v32 = vmul.f32 %v1326_v31, %v905_v17 }
 0xba2   :  { %v907_v50 = vadd.f32 %v1326_v31, %v906_v32 }
 0xba4   :  { %v911_v57 = vsel %vm910_vm13, %v1326_v31, %v907_v50 }
 0xba5   :  { %v916_v38 = vsel %vm913_vm14, %v915_v35, %v911_v57 }
 0xbf7   :  { %v923_v26 = vpop.permute.xlu2 %922 }
 0xbf8   :  { %v925_v36 = vadd.f32 %v923_v26, %v919_v49 }
 0xbfa   :  { %1327 = vtanh.f32 %v925_v36 }
 0xc00   :  { %v1328_v40 = vpop.eup %1327 }
 0xc01   :  { %v927_v44 = vmul.f32 %v1328_v40, %v916_v38 }
 0xc03   :  { %v928_v51 = vmax.f32 %v1791_v60, %v927_v44 }
 0xc05   :  { %v929_v30 = vpack.c.bf16 %v928_v51, %v928_v51 }
 0xc07   :  { %950 = vrot.lane.b32.xlu0 %v929_v30, %s1334_s0 }
 0xc79   :  { %v951_v12 = vpop.permute.xlu0 %950 }
 0xc7a   :  { %1185 = vmatmul.msk.bf16.vlgmr.msrb.gmra.mxu0 %vm247_vm12, %v951_v12 }
 0xcf7   :  { %v988_v8 = vpop.f32.mrf.mxu0 }
 0xcf8   :  { %v989_v14 = vadd.f32 %v988_v8, %v948_v22 }
 0xcfa   :  { %v996_v55 = vadd.f32 %v1231_v62, %v989_v14 }
 0xcfc   :  { %v997_v19 = vmax.f32 %v996_v55, 0.0 }
 0xcfe   :  { %v998_v24 = vpack.c.bf16 %v997_v19, %v997_v19 }
 0xcff   :  { %v990_v53 = vpop.f32.mrf.mxu0 }
 0xd00   :  { %1202 = vmatmul.msk.bf16.vlgmr.msrb.gmra.mxu1 %vm247_vm12, %v998_v24 }
 0xd7d   :  { %v1047_v60 = vpop.f32.mrf.mxu1 }
 0xd7e   :  { %v1048_v59 = vadd.f32 %v1232_v58, %v1047_v60 }
 0xd80   :  { %v1203_v61 = vmul.f32 -1.442695, %v1048_v59 }
 0xd82   :  { %1329 = vpow2.f32 %v1203_v61 }
 0xd85   :  { %v1049_v63 = vpop.f32.mrf.mxu1 }
 0xd88   :  { %v1330_v9 = vpop.eup %1329 }
 0xd89   :  { %v1054_v15 = vadd.f32 1.0, %v1330_v9 }
 0xd8b   :  { %1331 = vrcp.f32 %v1054_v15  ;;  %v1066_v33 = vand.u32 2147483648, %v1054_v15  ;;  %v1064_v5 = vand.u32 2147483647, %v1054_v15  ;;  %vm1060_vm12 = vweird.f32 %v1054_v15 }
 0xd8d   :  { %v1067_v6 = vor.u32 1.1754944e-38, %v1066_v33  ;;  %vm1065_vm1 = vcmp.eq.f32.partialorder %v1064_v5, 8.507059e+37 }
 0xd91   :  { %v1332_v13 = vpop.eup %1331 }
 0xd92   :  { %v1056_v0 = vmul.f32 %v1332_v13, %v1054_v15  ;;  %vm1061_vm15 = vweird.f32 %v1332_v13 }
 0xd93   :  { %vm1062_vm0 = vmor %vm1060_vm12, %vm1061_vm15 }
 0xd94   :  { %v1057_v2 = vsub.f32 1.0, %v1056_v0 }
 0xd96   :  { %v1058_v4 = vmul.f32 %v1332_v13, %v1057_v2 }
 0xd98   :  { %v1059_v16 = vadd.f32 %v1332_v13, %v1058_v4 }
 0xd9a   :  { %v1063_v1 = vsel %vm1062_vm0, %v1332_v13, %v1059_v16 }
 0xd9b   :  { %v1068_v41 = vsel %vm1065_vm1, %v1067_v6, %v1063_v1 }
 0xd9c   :  { %1070 = vst [vmem:[%s1861_s10] sm:$0xff] %v1068_v41 }

</bundles_post_ra>
